<compile_context>
chip_gen: v6e
topology: v6e:2x2x1
jax: 0.10.0
libtpu: 0.0.40
codegen_flags: <defaults>
</compile_context>

<pallas_src>
import math

import numpy as np

import jax
import jax.numpy as jnp
from jax.experimental import pallas as pl
from jax.experimental.pallas import tpu as pltpu

_VMEM = pl.BlockSpec(memory_space=pltpu.MemorySpace.VMEM)
_BF16 = jnp.bfloat16


def _round_up(x, m):
    return ((x + m - 1) // m) * m


# ---------------------------------------------------------------------------
# Constant Kronecker-structured lane matrices (numpy, built once).
# The lane axis is the row-major flattening of (B, M, K, NR, NT).
# ---------------------------------------------------------------------------
def _kron(*mats):
    out = mats[0]
    for m in mats[1:]:
        out = np.kron(out, m)
    return out


def _eye(n):
    return np.eye(n, dtype=np.float32)


def _mean_bcast(shape, axes):
    """(L, L): mean over `axes`, broadcast back over them."""
    return _kron(*[np.full((n, n), 1.0 / n, np.float32) if i in axes else _eye(n)
                   for i, n in enumerate(shape)])


def _mean_reduce(shape, axes):
    """(L, L_kept): mean over `axes`; kept axes stay in original order."""
    return _kron(*[np.full((n, 1), 1.0 / n, np.float32) if i in axes else _eye(n)
                   for i, n in enumerate(shape)])


def _bcast(shape, axes):
    """(L_kept, L): broadcast kept-axis values over `axes`."""
    return _kron(*[np.ones((1, n), np.float32) if i in axes else _eye(n)
                   for i, n in enumerate(shape)])


def _build_constants(B, M, K, NR, NT, is_attention, equal_user, equal_rb):
    shape = (B, M, K, NR, NT)
    L = int(np.prod(shape))
    s_m = _mean_bcast(shape, (1,))        # mean over RB (M), broadcast back
    s_nt = _mean_bcast(shape, (4,))       # mean over NT
    s_nr = _mean_bcast(shape, (3,))       # mean over NR
    if is_attention:
        perms = []
        for d in range(1, K):             # d = 0 identity plane dropped (free)
            pk = np.zeros((K, K), np.float32)
            for j in range(K):
                pk[(j + d) % K, j] = 1.0  # out user j <- in user (j + d) % K
            perms.append(_kron(_eye(B), _eye(M), pk, _eye(NR), _eye(NT)))
        extra = np.stack(perms) if perms else _eye(L)[None]
    else:
        extra = _mean_bcast(shape, (2, 3))            # mean over (K, NR)
    # head constants
    rx = _mean_reduce(shape, (1, 4))      # (L, B*K*NR): mean over M, NT
    ry = _mean_reduce(shape, (3, 4))      # (L, B*M*K):  mean over NR, NT
    rz = _mean_reduce(shape, (1, 2, 3))   # (L, B*NT):   mean over M, K, NR
    ey = _bcast((B, M, K, NT), (3,))      # (B*M*K, B*M*K*NT)
    ez = _bcast((B, M, K, NT), (1, 2))    # (B*NT,  B*M*K*NT)
    fm = _eye(M) if equal_rb else np.ones((M, M), np.float32)
    fk = _eye(K) if equal_user else np.ones((K, K), np.float32)
    pw = _kron(_eye(B), fm, fk, np.ones((NT, 1), np.float32))   # (B*M*K*NT, B*M*K)
    if equal_rb and equal_user:
        scale = math.sqrt(M * K)
    elif equal_rb:
        scale = math.sqrt(M)
    elif equal_user:
        scale = math.sqrt(K)
    else:
        scale = 1.0
    consts = [s_m, s_nt, s_nr, extra, rx, ry, rz, ey, ez, pw]
    # mean / permutation / selection entries are exact in bf16 at these sizes
    # -> halves constant VMEM + DMA bytes and feeds the bf16-native MXU.
    return [jnp.asarray(c, _BF16) for c in consts], scale


# ---------------------------------------------------------------------------
# Parameters: P1..P5 (+Q, K) ~ U(-ini, ini), ini = sqrt(3 / cout / cin), like
# PyTorch.  Stored as the fused, coefficient-folded, 8-aligned bf16 stacks the
# kernel consumes (built once at init, never re-materialised per forward).
# ---------------------------------------------------------------------------
def init_params(key, dims, is_attention):
    params = []
    for i in range(len(dims) - 1):
        cin, cout = dims[i], dims[i + 1]
        cin_pad, cout_pad = _round_up(cin, 8), _round_up(cout, 8)
        ini = math.sqrt(3.0 / cout / cin)
        n_draw = 7 if is_attention else 5
        key, *subs = jax.random.split(key, n_draw + 1)
        P = [jax.random.uniform(s, (cout, cin), jnp.float32, -ini, ini)
             for s in subs]                       # P1..P5 (, Q, K)

        def pad(w):
            return jnp.zeros((cout_pad, cin_pad), jnp.float32).at[:cout, :cin].set(w)

        if is_attention:
            # out = P1 X + 0.1 P2 Xm + 0.1 P3 Xnt + 0.5 P4 Xnr + (2/K) attn
            w_main = jnp.concatenate(
                [pad(P[0]), 0.1 * pad(P[1]), 0.1 * pad(P[2]), 0.5 * pad(P[3])], axis=1)
            w_qkv = jnp.concatenate([pad(P[5]), pad(P[6]), pad(P[4])], axis=0)  # [Q;K;P5]
            params.append((w_main.astype(_BF16), w_qkv.astype(_BF16)))
        else:
            # out = P1 X + 0.1 (P2 Xm + P3 Xnt + P4 Xnr + P5 Xkr)
            w_main = jnp.concatenate(
                [pad(P[0])] + [0.1 * pad(P[j]) for j in (1, 2, 3, 4)], axis=1)
            params.append((w_main.astype(_BF16),))
    return params


# ---------------------------------------------------------------------------
# The whole network as ONE fused pallas_call.
# ---------------------------------------------------------------------------
def make_forward(dims, B, M, K, NR, NT, nrf, is_attention, equal_user, equal_rb):
    dims = tuple(dims)
    L = B * M * K * NR * NT
    n_layers = len(dims) - 1
    assert dims[-1] >= 2 + 4 * nrf
    cin_pad0 = _round_up(dims[0], 8)
    cout_pads = [_round_up(dims[i + 1], 8) for i in range(n_layers)]
    n_w = 2 if is_attention else 1

    consts, scale = _build_constants(B, M, K, NR, NT, is_attention,
                                     equal_user, equal_rb)
    inv_scale = 1.0 / scale

    lx, ly, lz = B * K * NR, B * M * K, B * NT     # head column counts
    out_rows = _round_up(2 + 2 * nrf, 8)
    out_cols = _round_up(max(lx, ly + lz), 128)

    def kernel(*refs):
        x_ref = refs[0]
        sm_ref, snt_ref, snr_ref, ex_ref = refs[1:5]
        rx_ref, ry_ref, rz_ref, ey_ref, ez_ref, pw_ref = refs[5:11]
        w_refs = refs[11:-1]
        o_ref = refs[-1]

        def dot(a, b):   # every MXU matmul: bf16 x bf16, f32 accumulation
            return jnp.dot(a.astype(_BF16), b.astype(_BF16),
                           preferred_element_type=jnp.float32)

        x = x_ref[...].astype(jnp.float32)         # (cin_pad0, L)
        for i in range(n_layers):
            cpad = cout_pads[i]
            last = i == n_layers - 1
            # input-side pre-aggregation (mean + broadcast as lane matmuls)
            xm = dot(x, sm_ref[...])               # mean over M
            xnt = dot(x, snt_ref[...])             # mean over NT
            xnr = dot(x, snr_ref[...])             # mean over NR
            if is_attention:
                stacked = jnp.concatenate([x, xm, xnt, xnr], axis=0)
                out = dot(w_refs[n_w * i][...], stacked)        # one fat matmul
                qkv = dot(w_refs[n_w * i + 1][...], xnr)        # [Q;K;P5] @ Xnr
                q = qkv[:cpad]
                kk = qkv[cpad:2 * cpad]
                v = qkv[2 * cpad:3 * cpad]
                # user shift d = 0 (identity, no permutation matmul)
                acc = jnp.tanh(dot(q * kk, snt_ref[...])) * v
                kv = jnp.concatenate([kk, v], axis=0)           # (2*cpad, L)
                for d in range(1, K):              # d > 0: one perm matmul for K and V
                    kvd = dot(kv, ex_ref[d - 1])
                    kd, vd = kvd[:cpad], kvd[cpad:2 * cpad]
                    acc = acc + jnp.tanh(dot(q * kd, snt_ref[...])) * vd
                out = out + (2.0 / K) * acc
            else:
                xkr = dot(x, ex_ref[...])          # mean over (K, NR)
                stacked = jnp.concatenate([x, xm, xnt, xnr, xkr], axis=0)
                out = dot(w_refs[n_w * i][...], stacked)
            if not last:
                out = jnp.maximum(out, 0.0)        # ReLU
                # BatchNorm1d, train-mode batch stats (gamma=1, beta=0, eps=1e-5):
                # one lane reduction per channel row in the (C, B*spatial) layout.
                # TODO(synk): running_mean/var buffer updates (training state)
                # are not reproduced; they do not affect this forward output.
                mu = jnp.mean(out, axis=1, keepdims=True)
                xc = out - mu
                var = jnp.mean(xc * xc, axis=1, keepdims=True)
                out = xc * jax.lax.rsqrt(var + 1e-5)
            x = out

        # ---- head: static channel slices + one shared right-multiply each ----
        x12 = dot(x[0:2], rx_ref[...])                       # (2, B*K*NR)
        y12 = dot(x[2:2 + 2 * nrf], ry_ref[...])             # (2*nrf, B*M*K)
        z12 = dot(x[2 + 2 * nrf:2 + 4 * nrf], rz_ref[...])   # (2*nrf, B*NT)

        # modulus normalisations (no eps, matching the PyTorch reference which
        # divides by sqrt(x1^2 + x2^2) directly).
        xn = x12 * jax.lax.rsqrt(x12[0:1] ** 2 + x12[1:2] ** 2)
        inv_mz = jax.lax.rsqrt(z12[:nrf] ** 2 + z12[nrf:] ** 2)
        zn = z12 * jnp.concatenate([inv_mz, inv_mz], axis=0)

        # W = complex_matmul(z, y): broadcast both onto the (B,M,K,NT) lane
        # grid (single matmul each) and contract over the NRF sublane rows.
        ye = dot(y12, ey_ref[...])                           # (2*nrf, B*M*K*NT)
        ze = dot(zn, ez_ref[...])                            # (2*nrf, B*M*K*NT)
        wre = jnp.sum(ze[:nrf] * ye[:nrf] - ze[nrf:] * ye[nrf:], axis=0, keepdims=True)
        wim = jnp.sum(ze[:nrf] * ye[nrf:] + ze[nrf:] * ye[:nrf], axis=0, keepdims=True)
        amp = wre * wre + wim * wim                          # (1, B*M*K*NT)
        pwr = dot(amp, pw_ref[...])                          # (1, B*M*K) power sums
        yn = y12 * (jax.lax.rsqrt(pwr) * inv_scale)

        # single lane-dense output slab -> one dense (out_rows, out_cols) writeback
        o_ref[...] = jnp.zeros((out_rows, out_cols), jnp.float32)
        o_ref[0:2, 0:lx] = xn
        o_ref[2:2 + 2 * nrf, 0:ly] = yn
        o_ref[2:2 + 2 * nrf, ly:ly + lz] = zn

    n_inputs = 11 + n_w * n_layers
    call = pl.pallas_call(
        kernel,
        out_shape=jax.ShapeDtypeStruct((out_rows, out_cols), jnp.float32),
        in_specs=[_VMEM] * n_inputs,
        out_specs=_VMEM,
    )

    def forward(A, params):
        cin0 = A.shape[1]
        # one-time layout glue: (B, C, M, K, NR, NT) -> lane-dense (C_pad, L)
        x0 = jnp.transpose(A, (1, 0, 2, 3, 4, 5)).reshape(cin0, L)
        if cin_pad0 > cin0:
            x0 = jnp.concatenate(
                [x0, jnp.zeros((cin_pad0 - cin0, L), x0.dtype)], axis=0)
        flat_w = [w for layer in params for w in layer]
        slab = call(x0, *consts, *flat_w)
        # unpack + reshape to the exact PyTorch output shapes (layout glue only)
        xn = slab[0:2, 0:lx]
        yn = slab[2:2 + 2 * nrf, 0:ly]
        zn = slab[2:2 + 2 * nrf, ly:ly + lz]
        x = jnp.transpose(xn.reshape(2, B, K, NR), (1, 0, 2, 3))[:, :, None, :, None, :]
        y = jnp.transpose(yn.reshape(2, nrf, B, M, K), (2, 0, 3, 4, 1))[..., None]
        z = jnp.transpose(zn.reshape(2, nrf, B, NT), (2, 0, 3, 1))[:, :, None, None, :, :]
        return x, y, z

    return forward


if __name__ == "__main__":
    key = jax.random.PRNGKey(0)
    B, M, K, NR, NT = 2, 2, 2, 4, 4
    NRF = 2
    input_dim = 2
    hidden_dim = (16, 16)
    output_dim = 2 + 4 * NRF
    is_attention = True
    equal_user, equal_RB = True, True

    dims = [input_dim] + list(hidden_dim) + [output_dim]
    k_param, k_data = jax.random.split(key)
    params = init_params(k_param, dims, is_attention)
    A = jax.random.normal(k_data, (B, input_dim, M, K, NR, NT), dtype=jnp.float32)

    forward = make_forward(tuple(dims), B, M, K, NR, NT, NRF, is_attention,
                           equal_user, equal_RB)
    fwd = jax.jit(forward)
    x, y, z = fwd(A, params)
    jax.block_until_ready((x, y, z))

    assert x.shape == (B, 2, 1, K, 1, NR)
    assert y.shape == (B, 2, M, K, NRF, 1)
    assert z.shape == (B, 2, 1, 1, NT, NRF)
    assert all(bool(jnp.isfinite(t).all()) for t in (x, y, z))
    print("KERNEL_OK")
</pallas_src>

<mosaic_0001>
module attributes {stable_mosaic.version = 11 : i64} {
  func.func @kernel(%arg0: memref<8x128xf32, #tpu.memory_space<vmem>>, %arg1: memref<128x128xbf16, #tpu.memory_space<vmem>>, %arg2: memref<128x128xbf16, #tpu.memory_space<vmem>>, %arg3: memref<128x128xbf16, #tpu.memory_space<vmem>>, %arg4: memref<1x128x128xbf16, #tpu.memory_space<vmem>>, %arg5: memref<128x16xbf16, #tpu.memory_space<vmem>>, %arg6: memref<128x8xbf16, #tpu.memory_space<vmem>>, %arg7: memref<128x8xbf16, #tpu.memory_space<vmem>>, %arg8: memref<8x32xbf16, #tpu.memory_space<vmem>>, %arg9: memref<8x32xbf16, #tpu.memory_space<vmem>>, %arg10: memref<32x8xbf16, #tpu.memory_space<vmem>>, %arg11: memref<16x32xbf16, #tpu.memory_space<vmem>>, %arg12: memref<48x8xbf16, #tpu.memory_space<vmem>>, %arg13: memref<16x64xbf16, #tpu.memory_space<vmem>>, %arg14: memref<48x16xbf16, #tpu.memory_space<vmem>>, %arg15: memref<16x64xbf16, #tpu.memory_space<vmem>>, %arg16: memref<48x16xbf16, #tpu.memory_space<vmem>>, %arg17: memref<8x128xf32, #tpu.memory_space<vmem>>) attributes {dimension_semantics = [], scalar_prefetch = 0 : i64, scratch_operands = 0 : i64, tpu.core_type = #tpu.core_type<tc>} {
    %c0 = arith.constant 0 : index
    %c0_0 = arith.constant 0 : index
    %0 = vector.load %arg0[%c0, %c0_0] : memref<8x128xf32, #tpu.memory_space<vmem>>, vector<8x128xf32>
    %c0_1 = arith.constant 0 : index
    %c0_2 = arith.constant 0 : index
    %1 = vector.load %arg1[%c0_1, %c0_2] : memref<128x128xbf16, #tpu.memory_space<vmem>>, vector<128x128xbf16>
    %2 = arith.truncf %0 : vector<8x128xf32> to vector<8x128xbf16>
    %cst = arith.constant dense<0.000000e+00> : vector<8x128xf32>
    %3 = tpu.matmul %2, %1, %cst {dimension_numbers = #tpu.dot_dimension_numbers<[1], [0], [0], [1], [0, 0, 1, 1], [], []>} : vector<8x128xbf16>, vector<128x128xbf16>, vector<8x128xf32> -> vector<8x128xf32>
    %c0_3 = arith.constant 0 : index
    %c0_4 = arith.constant 0 : index
    %4 = vector.load %arg2[%c0_3, %c0_4] : memref<128x128xbf16, #tpu.memory_space<vmem>>, vector<128x128xbf16>
    %5 = arith.truncf %0 : vector<8x128xf32> to vector<8x128xbf16>
    %cst_5 = arith.constant dense<0.000000e+00> : vector<8x128xf32>
    %6 = tpu.matmul %5, %4, %cst_5 {dimension_numbers = #tpu.dot_dimension_numbers<[1], [0], [0], [1], [0, 0, 1, 1], [], []>} : vector<8x128xbf16>, vector<128x128xbf16>, vector<8x128xf32> -> vector<8x128xf32>
    %c0_6 = arith.constant 0 : index
    %c0_7 = arith.constant 0 : index
    %7 = vector.load %arg3[%c0_6, %c0_7] : memref<128x128xbf16, #tpu.memory_space<vmem>>, vector<128x128xbf16>
    %8 = arith.truncf %0 : vector<8x128xf32> to vector<8x128xbf16>
    %cst_8 = arith.constant dense<0.000000e+00> : vector<8x128xf32>
    %9 = tpu.matmul %8, %7, %cst_8 {dimension_numbers = #tpu.dot_dimension_numbers<[1], [0], [0], [1], [0, 0, 1, 1], [], []>} : vector<8x128xbf16>, vector<128x128xbf16>, vector<8x128xf32> -> vector<8x128xf32>
    %10 = tpu.concatenate %0, %3, %6, %9 in 0 : vector<8x128xf32>, vector<8x128xf32>, vector<8x128xf32>, vector<8x128xf32> -> vector<32x128xf32>
    %c0_9 = arith.constant 0 : index
    %c0_10 = arith.constant 0 : index
    %11 = vector.load %arg11[%c0_9, %c0_10] : memref<16x32xbf16, #tpu.memory_space<vmem>>, vector<16x32xbf16>
    %12 = arith.truncf %10 : vector<32x128xf32> to vector<32x128xbf16>
    %cst_11 = arith.constant dense<0.000000e+00> : vector<16x128xf32>
    %13 = tpu.matmul %11, %12, %cst_11 {dimension_numbers = #tpu.dot_dimension_numbers<[1], [0], [0], [1], [0, 0, 1, 1], [], []>} : vector<16x32xbf16>, vector<32x128xbf16>, vector<16x128xf32> -> vector<16x128xf32>
    %c0_12 = arith.constant 0 : index
    %c0_13 = arith.constant 0 : index
    %14 = vector.load %arg12[%c0_12, %c0_13] : memref<48x8xbf16, #tpu.memory_space<vmem>>, vector<48x8xbf16>
    %15 = arith.truncf %9 : vector<8x128xf32> to vector<8x128xbf16>
    %cst_14 = arith.constant dense<0.000000e+00> : vector<48x128xf32>
    %16 = tpu.matmul %14, %15, %cst_14 {dimension_numbers = #tpu.dot_dimension_numbers<[1], [0], [0], [1], [0, 0, 1, 1], [], []>} : vector<48x8xbf16>, vector<8x128xbf16>, vector<48x128xf32> -> vector<48x128xf32>
    %17 = vector.extract_strided_slice %16 {offsets = [0, 0], sizes = [16, 128], strides = [1, 1]} : vector<48x128xf32> to vector<16x128xf32>
    %18 = vector.extract_strided_slice %16 {offsets = [16, 0], sizes = [16, 128], strides = [1, 1]} : vector<48x128xf32> to vector<16x128xf32>
    %19 = vector.extract_strided_slice %16 {offsets = [32, 0], sizes = [16, 128], strides = [1, 1]} : vector<48x128xf32> to vector<16x128xf32>
    %20 = arith.mulf %17, %18 : vector<16x128xf32>
    %c0_15 = arith.constant 0 : index
    %c0_16 = arith.constant 0 : index
    %21 = vector.load %arg2[%c0_15, %c0_16] : memref<128x128xbf16, #tpu.memory_space<vmem>>, vector<128x128xbf16>
    %22 = arith.truncf %20 : vector<16x128xf32> to vector<16x128xbf16>
    %cst_17 = arith.constant dense<0.000000e+00> : vector<16x128xf32>
    %23 = tpu.matmul %22, %21, %cst_17 {dimension_numbers = #tpu.dot_dimension_numbers<[1], [0], [0], [1], [0, 0, 1, 1], [], []>} : vector<16x128xbf16>, vector<128x128xbf16>, vector<16x128xf32> -> vector<16x128xf32>
    %24 = math.tanh %23 : vector<16x128xf32>
    %25 = arith.mulf %24, %19 : vector<16x128xf32>
    %26 = tpu.concatenate %18, %19 in 0 : vector<16x128xf32>, vector<16x128xf32> -> vector<32x128xf32>
    %c0_18 = arith.constant 0 : index
    %c0_19 = arith.constant 0 : index
    %c0_20 = arith.constant 0 : index
    %27 = vector.load %arg4[%c0_18, %c0_19, %c0_20] : memref<1x128x128xbf16, #tpu.memory_space<vmem>>, vector<1x128x128xbf16>
    %28 = vector.shape_cast %27 : vector<1x128x128xbf16> to vector<128x128xbf16>
    %29 = arith.truncf %26 : vector<32x128xf32> to vector<32x128xbf16>
    %cst_21 = arith.constant dense<0.000000e+00> : vector<32x128xf32>
    %30 = tpu.matmul %29, %28, %cst_21 {dimension_numbers = #tpu.dot_dimension_numbers<[1], [0], [0], [1], [0, 0, 1, 1], [], []>} : vector<32x128xbf16>, vector<128x128xbf16>, vector<32x128xf32> -> vector<32x128xf32>
    %31 = vector.extract_strided_slice %30 {offsets = [0, 0], sizes = [16, 128], strides = [1, 1]} : vector<32x128xf32> to vector<16x128xf32>
    %32 = vector.extract_strided_slice %30 {offsets = [16, 0], sizes = [16, 128], strides = [1, 1]} : vector<32x128xf32> to vector<16x128xf32>
    %33 = arith.mulf %17, %31 : vector<16x128xf32>
    %c0_22 = arith.constant 0 : index
    %c0_23 = arith.constant 0 : index
    %34 = vector.load %arg2[%c0_22, %c0_23] : memref<128x128xbf16, #tpu.memory_space<vmem>>, vector<128x128xbf16>
    %35 = arith.truncf %33 : vector<16x128xf32> to vector<16x128xbf16>
    %cst_24 = arith.constant dense<0.000000e+00> : vector<16x128xf32>
    %36 = tpu.matmul %35, %34, %cst_24 {dimension_numbers = #tpu.dot_dimension_numbers<[1], [0], [0], [1], [0, 0, 1, 1], [], []>} : vector<16x128xbf16>, vector<128x128xbf16>, vector<16x128xf32> -> vector<16x128xf32>
    %37 = math.tanh %36 : vector<16x128xf32>
    %38 = arith.mulf %37, %32 : vector<16x128xf32>
    %39 = arith.addf %25, %38 : vector<16x128xf32>
    %cst_25 = arith.constant 1.000000e+00 : f32
    %40 = vector.broadcast %cst_25 : f32 to vector<16x128xf32>
    %41 = arith.mulf %40, %39 : vector<16x128xf32>
    %42 = arith.addf %13, %41 : vector<16x128xf32>
    %cst_26 = arith.constant 0.000000e+00 : f32
    %43 = vector.broadcast %cst_26 : f32 to vector<16x128xf32>
    %44 = arith.maximumf %42, %43 : vector<16x128xf32>
    %cst_27 = arith.constant dense<0.000000e+00> : vector<16xf32>
    %45 = vector.multi_reduction <add>, %44, %cst_27 [1] : vector<16x128xf32> to vector<16xf32>
    %46 = vector.shape_cast %45 : vector<16xf32> to vector<16x1xf32>
    %cst_28 = arith.constant 1.280000e+02 : f32
    %47 = vector.broadcast %cst_28 : f32 to vector<16x1xf32>
    %48 = arith.divf %46, %47 : vector<16x1xf32>
    %49 = vector.broadcast %48 : vector<16x1xf32> to vector<16x128xf32>
    %50 = arith.subf %44, %49 : vector<16x128xf32>
    %51 = arith.mulf %50, %50 : vector<16x128xf32>
    %cst_29 = arith.constant dense<0.000000e+00> : vector<16xf32>
    %52 = vector.multi_reduction <add>, %51, %cst_29 [1] : vector<16x128xf32> to vector<16xf32>
    %53 = vector.shape_cast %52 : vector<16xf32> to vector<16x1xf32>
    %cst_30 = arith.constant 1.280000e+02 : f32
    %54 = vector.broadcast %cst_30 : f32 to vector<16x1xf32>
    %55 = arith.divf %53, %54 : vector<16x1xf32>
    %cst_31 = arith.constant 9.99999974E-6 : f32
    %56 = vector.broadcast %cst_31 : f32 to vector<16x1xf32>
    %57 = arith.addf %55, %56 : vector<16x1xf32>
    %58 = math.rsqrt %57 : vector<16x1xf32>
    %59 = vector.broadcast %58 : vector<16x1xf32> to vector<16x128xf32>
    %60 = arith.mulf %50, %59 : vector<16x128xf32>
    %c0_32 = arith.constant 0 : index
    %c0_33 = arith.constant 0 : index
    %61 = vector.load %arg1[%c0_32, %c0_33] : memref<128x128xbf16, #tpu.memory_space<vmem>>, vector<128x128xbf16>
    %62 = arith.truncf %60 : vector<16x128xf32> to vector<16x128xbf16>
    %cst_34 = arith.constant dense<0.000000e+00> : vector<16x128xf32>
    %63 = tpu.matmul %62, %61, %cst_34 {dimension_numbers = #tpu.dot_dimension_numbers<[1], [0], [0], [1], [0, 0, 1, 1], [], []>} : vector<16x128xbf16>, vector<128x128xbf16>, vector<16x128xf32> -> vector<16x128xf32>
    %c0_35 = arith.constant 0 : index
    %c0_36 = arith.constant 0 : index
    %64 = vector.load %arg2[%c0_35, %c0_36] : memref<128x128xbf16, #tpu.memory_space<vmem>>, vector<128x128xbf16>
    %65 = arith.truncf %60 : vector<16x128xf32> to vector<16x128xbf16>
    %cst_37 = arith.constant dense<0.000000e+00> : vector<16x128xf32>
    %66 = tpu.matmul %65, %64, %cst_37 {dimension_numbers = #tpu.dot_dimension_numbers<[1], [0], [0], [1], [0, 0, 1, 1], [], []>} : vector<16x128xbf16>, vector<128x128xbf16>, vector<16x128xf32> -> vector<16x128xf32>
    %c0_38 = arith.constant 0 : index
    %c0_39 = arith.constant 0 : index
    %67 = vector.load %arg3[%c0_38, %c0_39] : memref<128x128xbf16, #tpu.memory_space<vmem>>, vector<128x128xbf16>
    %68 = arith.truncf %60 : vector<16x128xf32> to vector<16x128xbf16>
    %cst_40 = arith.constant dense<0.000000e+00> : vector<16x128xf32>
    %69 = tpu.matmul %68, %67, %cst_40 {dimension_numbers = #tpu.dot_dimension_numbers<[1], [0], [0], [1], [0, 0, 1, 1], [], []>} : vector<16x128xbf16>, vector<128x128xbf16>, vector<16x128xf32> -> vector<16x128xf32>
    %70 = tpu.concatenate %60, %63, %66, %69 in 0 : vector<16x128xf32>, vector<16x128xf32>, vector<16x128xf32>, vector<16x128xf32> -> vector<64x128xf32>
    %c0_41 = arith.constant 0 : index
    %c0_42 = arith.constant 0 : index
    %71 = vector.load %arg13[%c0_41, %c0_42] : memref<16x64xbf16, #tpu.memory_space<vmem>>, vector<16x64xbf16>
    %72 = arith.truncf %70 : vector<64x128xf32> to vector<64x128xbf16>
    %cst_43 = arith.constant dense<0.000000e+00> : vector<16x128xf32>
    %73 = tpu.matmul %71, %72, %cst_43 {dimension_numbers = #tpu.dot_dimension_numbers<[1], [0], [0], [1], [0, 0, 1, 1], [], []>} : vector<16x64xbf16>, vector<64x128xbf16>, vector<16x128xf32> -> vector<16x128xf32>
    %c0_44 = arith.constant 0 : index
    %c0_45 = arith.constant 0 : index
    %74 = vector.load %arg14[%c0_44, %c0_45] : memref<48x16xbf16, #tpu.memory_space<vmem>>, vector<48x16xbf16>
    %75 = arith.truncf %69 : vector<16x128xf32> to vector<16x128xbf16>
    %cst_46 = arith.constant dense<0.000000e+00> : vector<48x128xf32>
    %76 = tpu.matmul %74, %75, %cst_46 {dimension_numbers = #tpu.dot_dimension_numbers<[1], [0], [0], [1], [0, 0, 1, 1], [], []>} : vector<48x16xbf16>, vector<16x128xbf16>, vector<48x128xf32> -> vector<48x128xf32>
    %77 = vector.extract_strided_slice %76 {offsets = [0, 0], sizes = [16, 128], strides = [1, 1]} : vector<48x128xf32> to vector<16x128xf32>
    %78 = vector.extract_strided_slice %76 {offsets = [16, 0], sizes = [16, 128], strides = [1, 1]} : vector<48x128xf32> to vector<16x128xf32>
    %79 = vector.extract_strided_slice %76 {offsets = [32, 0], sizes = [16, 128], strides = [1, 1]} : vector<48x128xf32> to vector<16x128xf32>
    %80 = arith.mulf %77, %78 : vector<16x128xf32>
    %c0_47 = arith.constant 0 : index
    %c0_48 = arith.constant 0 : index
    %81 = vector.load %arg2[%c0_47, %c0_48] : memref<128x128xbf16, #tpu.memory_space<vmem>>, vector<128x128xbf16>
    %82 = arith.truncf %80 : vector<16x128xf32> to vector<16x128xbf16>
    %cst_49 = arith.constant dense<0.000000e+00> : vector<16x128xf32>
    %83 = tpu.matmul %82, %81, %cst_49 {dimension_numbers = #tpu.dot_dimension_numbers<[1], [0], [0], [1], [0, 0, 1, 1], [], []>} : vector<16x128xbf16>, vector<128x128xbf16>, vector<16x128xf32> -> vector<16x128xf32>
    %84 = math.tanh %83 : vector<16x128xf32>
    %85 = arith.mulf %84, %79 : vector<16x128xf32>
    %86 = tpu.concatenate %78, %79 in 0 : vector<16x128xf32>, vector<16x128xf32> -> vector<32x128xf32>
    %c0_50 = arith.constant 0 : index
    %c0_51 = arith.constant 0 : index
    %c0_52 = arith.constant 0 : index
    %87 = vector.load %arg4[%c0_50, %c0_51, %c0_52] : memref<1x128x128xbf16, #tpu.memory_space<vmem>>, vector<1x128x128xbf16>
    %88 = vector.shape_cast %87 : vector<1x128x128xbf16> to vector<128x128xbf16>
    %89 = arith.truncf %86 : vector<32x128xf32> to vector<32x128xbf16>
    %cst_53 = arith.constant dense<0.000000e+00> : vector<32x128xf32>
    %90 = tpu.matmul %89, %88, %cst_53 {dimension_numbers = #tpu.dot_dimension_numbers<[1], [0], [0], [1], [0, 0, 1, 1], [], []>} : vector<32x128xbf16>, vector<128x128xbf16>, vector<32x128xf32> -> vector<32x128xf32>
    %91 = vector.extract_strided_slice %90 {offsets = [0, 0], sizes = [16, 128], strides = [1, 1]} : vector<32x128xf32> to vector<16x128xf32>
    %92 = vector.extract_strided_slice %90 {offsets = [16, 0], sizes = [16, 128], strides = [1, 1]} : vector<32x128xf32> to vector<16x128xf32>
    %93 = arith.mulf %77, %91 : vector<16x128xf32>
    %c0_54 = arith.constant 0 : index
    %c0_55 = arith.constant 0 : index
    %94 = vector.load %arg2[%c0_54, %c0_55] : memref<128x128xbf16, #tpu.memory_space<vmem>>, vector<128x128xbf16>
    %95 = arith.truncf %93 : vector<16x128xf32> to vector<16x128xbf16>
    %cst_56 = arith.constant dense<0.000000e+00> : vector<16x128xf32>
    %96 = tpu.matmul %95, %94, %cst_56 {dimension_numbers = #tpu.dot_dimension_numbers<[1], [0], [0], [1], [0, 0, 1, 1], [], []>} : vector<16x128xbf16>, vector<128x128xbf16>, vector<16x128xf32> -> vector<16x128xf32>
    %97 = math.tanh %96 : vector<16x128xf32>
    %98 = arith.mulf %97, %92 : vector<16x128xf32>
    %99 = arith.addf %85, %98 : vector<16x128xf32>
    %cst_57 = arith.constant 1.000000e+00 : f32
    %100 = vector.broadcast %cst_57 : f32 to vector<16x128xf32>
    %101 = arith.mulf %100, %99 : vector<16x128xf32>
    %102 = arith.addf %73, %101 : vector<16x128xf32>
    %cst_58 = arith.constant 0.000000e+00 : f32
    %103 = vector.broadcast %cst_58 : f32 to vector<16x128xf32>
    %104 = arith.maximumf %102, %103 : vector<16x128xf32>
    %cst_59 = arith.constant dense<0.000000e+00> : vector<16xf32>
    %105 = vector.multi_reduction <add>, %104, %cst_59 [1] : vector<16x128xf32> to vector<16xf32>
    %106 = vector.shape_cast %105 : vector<16xf32> to vector<16x1xf32>
    %cst_60 = arith.constant 1.280000e+02 : f32
    %107 = vector.broadcast %cst_60 : f32 to vector<16x1xf32>
    %108 = arith.divf %106, %107 : vector<16x1xf32>
    %109 = vector.broadcast %108 : vector<16x1xf32> to vector<16x128xf32>
    %110 = arith.subf %104, %109 : vector<16x128xf32>
    %111 = arith.mulf %110, %110 : vector<16x128xf32>
    %cst_61 = arith.constant dense<0.000000e+00> : vector<16xf32>
    %112 = vector.multi_reduction <add>, %111, %cst_61 [1] : vector<16x128xf32> to vector<16xf32>
    %113 = vector.shape_cast %112 : vector<16xf32> to vector<16x1xf32>
    %cst_62 = arith.constant 1.280000e+02 : f32
    %114 = vector.broadcast %cst_62 : f32 to vector<16x1xf32>
    %115 = arith.divf %113, %114 : vector<16x1xf32>
    %cst_63 = arith.constant 9.99999974E-6 : f32
    %116 = vector.broadcast %cst_63 : f32 to vector<16x1xf32>
    %117 = arith.addf %115, %116 : vector<16x1xf32>
    %118 = math.rsqrt %117 : vector<16x1xf32>
    %119 = vector.broadcast %118 : vector<16x1xf32> to vector<16x128xf32>
    %120 = arith.mulf %110, %119 : vector<16x128xf32>
    %c0_64 = arith.constant 0 : index
    %c0_65 = arith.constant 0 : index
    %121 = vector.load %arg1[%c0_64, %c0_65] : memref<128x128xbf16, #tpu.memory_space<vmem>>, vector<128x128xbf16>
    %122 = arith.truncf %120 : vector<16x128xf32> to vector<16x128xbf16>
    %cst_66 = arith.constant dense<0.000000e+00> : vector<16x128xf32>
    %123 = tpu.matmul %122, %121, %cst_66 {dimension_numbers = #tpu.dot_dimension_numbers<[1], [0], [0], [1], [0, 0, 1, 1], [], []>} : vector<16x128xbf16>, vector<128x128xbf16>, vector<16x128xf32> -> vector<16x128xf32>
    %c0_67 = arith.constant 0 : index
    %c0_68 = arith.constant 0 : index
    %124 = vector.load %arg2[%c0_67, %c0_68] : memref<128x128xbf16, #tpu.memory_space<vmem>>, vector<128x128xbf16>
    %125 = arith.truncf %120 : vector<16x128xf32> to vector<16x128xbf16>
    %cst_69 = arith.constant dense<0.000000e+00> : vector<16x128xf32>
    %126 = tpu.matmul %125, %124, %cst_69 {dimension_numbers = #tpu.dot_dimension_numbers<[1], [0], [0], [1], [0, 0, 1, 1], [], []>} : vector<16x128xbf16>, vector<128x128xbf16>, vector<16x128xf32> -> vector<16x128xf32>
    %c0_70 = arith.constant 0 : index
    %c0_71 = arith.constant 0 : index
    %127 = vector.load %arg3[%c0_70, %c0_71] : memref<128x128xbf16, #tpu.memory_space<vmem>>, vector<128x128xbf16>
    %128 = arith.truncf %120 : vector<16x128xf32> to vector<16x128xbf16>
    %cst_72 = arith.constant dense<0.000000e+00> : vector<16x128xf32>
    %129 = tpu.matmul %128, %127, %cst_72 {dimension_numbers = #tpu.dot_dimension_numbers<[1], [0], [0], [1], [0, 0, 1, 1], [], []>} : vector<16x128xbf16>, vector<128x128xbf16>, vector<16x128xf32> -> vector<16x128xf32>
    %130 = tpu.concatenate %120, %123, %126, %129 in 0 : vector<16x128xf32>, vector<16x128xf32>, vector<16x128xf32>, vector<16x128xf32> -> vector<64x128xf32>
    %c0_73 = arith.constant 0 : index
    %c0_74 = arith.constant 0 : index
    %131 = vector.load %arg15[%c0_73, %c0_74] : memref<16x64xbf16, #tpu.memory_space<vmem>>, vector<16x64xbf16>
    %132 = arith.truncf %130 : vector<64x128xf32> to vector<64x128xbf16>
    %cst_75 = arith.constant dense<0.000000e+00> : vector<16x128xf32>
    %133 = tpu.matmul %131, %132, %cst_75 {dimension_numbers = #tpu.dot_dimension_numbers<[1], [0], [0], [1], [0, 0, 1, 1], [], []>} : vector<16x64xbf16>, vector<64x128xbf16>, vector<16x128xf32> -> vector<16x128xf32>
    %c0_76 = arith.constant 0 : index
    %c0_77 = arith.constant 0 : index
    %134 = vector.load %arg16[%c0_76, %c0_77] : memref<48x16xbf16, #tpu.memory_space<vmem>>, vector<48x16xbf16>
    %135 = arith.truncf %129 : vector<16x128xf32> to vector<16x128xbf16>
    %cst_78 = arith.constant dense<0.000000e+00> : vector<48x128xf32>
    %136 = tpu.matmul %134, %135, %cst_78 {dimension_numbers = #tpu.dot_dimension_numbers<[1], [0], [0], [1], [0, 0, 1, 1], [], []>} : vector<48x16xbf16>, vector<16x128xbf16>, vector<48x128xf32> -> vector<48x128xf32>
    %137 = vector.extract_strided_slice %136 {offsets = [0, 0], sizes = [16, 128], strides = [1, 1]} : vector<48x128xf32> to vector<16x128xf32>
    %138 = vector.extract_strided_slice %136 {offsets = [16, 0], sizes = [16, 128], strides = [1, 1]} : vector<48x128xf32> to vector<16x128xf32>
    %139 = vector.extract_strided_slice %136 {offsets = [32, 0], sizes = [16, 128], strides = [1, 1]} : vector<48x128xf32> to vector<16x128xf32>
    %140 = arith.mulf %137, %138 : vector<16x128xf32>
    %c0_79 = arith.constant 0 : index
    %c0_80 = arith.constant 0 : index
    %141 = vector.load %arg2[%c0_79, %c0_80] : memref<128x128xbf16, #tpu.memory_space<vmem>>, vector<128x128xbf16>
    %142 = arith.truncf %140 : vector<16x128xf32> to vector<16x128xbf16>
    %cst_81 = arith.constant dense<0.000000e+00> : vector<16x128xf32>
    %143 = tpu.matmul %142, %141, %cst_81 {dimension_numbers = #tpu.dot_dimension_numbers<[1], [0], [0], [1], [0, 0, 1, 1], [], []>} : vector<16x128xbf16>, vector<128x128xbf16>, vector<16x128xf32> -> vector<16x128xf32>
    %144 = math.tanh %143 : vector<16x128xf32>
    %145 = arith.mulf %144, %139 : vector<16x128xf32>
    %146 = tpu.concatenate %138, %139 in 0 : vector<16x128xf32>, vector<16x128xf32> -> vector<32x128xf32>
    %c0_82 = arith.constant 0 : index
    %c0_83 = arith.constant 0 : index
    %c0_84 = arith.constant 0 : index
    %147 = vector.load %arg4[%c0_82, %c0_83, %c0_84] : memref<1x128x128xbf16, #tpu.memory_space<vmem>>, vector<1x128x128xbf16>
    %148 = vector.shape_cast %147 : vector<1x128x128xbf16> to vector<128x128xbf16>
    %149 = arith.truncf %146 : vector<32x128xf32> to vector<32x128xbf16>
    %cst_85 = arith.constant dense<0.000000e+00> : vector<32x128xf32>
    %150 = tpu.matmul %149, %148, %cst_85 {dimension_numbers = #tpu.dot_dimension_numbers<[1], [0], [0], [1], [0, 0, 1, 1], [], []>} : vector<32x128xbf16>, vector<128x128xbf16>, vector<32x128xf32> -> vector<32x128xf32>
    %151 = vector.extract_strided_slice %150 {offsets = [0, 0], sizes = [16, 128], strides = [1, 1]} : vector<32x128xf32> to vector<16x128xf32>
    %152 = vector.extract_strided_slice %150 {offsets = [16, 0], sizes = [16, 128], strides = [1, 1]} : vector<32x128xf32> to vector<16x128xf32>
    %153 = arith.mulf %137, %151 : vector<16x128xf32>
    %c0_86 = arith.constant 0 : index
    %c0_87 = arith.constant 0 : index
    %154 = vector.load %arg2[%c0_86, %c0_87] : memref<128x128xbf16, #tpu.memory_space<vmem>>, vector<128x128xbf16>
    %155 = arith.truncf %153 : vector<16x128xf32> to vector<16x128xbf16>
    %cst_88 = arith.constant dense<0.000000e+00> : vector<16x128xf32>
    %156 = tpu.matmul %155, %154, %cst_88 {dimension_numbers = #tpu.dot_dimension_numbers<[1], [0], [0], [1], [0, 0, 1, 1], [], []>} : vector<16x128xbf16>, vector<128x128xbf16>, vector<16x128xf32> -> vector<16x128xf32>
    %157 = math.tanh %156 : vector<16x128xf32>
    %158 = arith.mulf %157, %152 : vector<16x128xf32>
    %159 = arith.addf %145, %158 : vector<16x128xf32>
    %cst_89 = arith.constant 1.000000e+00 : f32
    %160 = vector.broadcast %cst_89 : f32 to vector<16x128xf32>
    %161 = arith.mulf %160, %159 : vector<16x128xf32>
    %162 = arith.addf %133, %161 : vector<16x128xf32>
    %163 = vector.extract_strided_slice %162 {offsets = [0, 0], sizes = [2, 128], strides = [1, 1]} : vector<16x128xf32> to vector<2x128xf32>
    %c0_90 = arith.constant 0 : index
    %c0_91 = arith.constant 0 : index
    %164 = vector.load %arg5[%c0_90, %c0_91] : memref<128x16xbf16, #tpu.memory_space<vmem>>, vector<128x16xbf16>
    %165 = arith.truncf %163 : vector<2x128xf32> to vector<2x128xbf16>
    %cst_92 = arith.constant dense<0.000000e+00> : vector<2x16xf32>
    %166 = tpu.matmul %165, %164, %cst_92 {dimension_numbers = #tpu.dot_dimension_numbers<[1], [0], [0], [1], [0, 0, 1, 1], [], []>} : vector<2x128xbf16>, vector<128x16xbf16>, vector<2x16xf32> -> vector<2x16xf32>
    %167 = vector.extract_strided_slice %162 {offsets = [2, 0], sizes = [4, 128], strides = [1, 1]} : vector<16x128xf32> to vector<4x128xf32>
    %c0_93 = arith.constant 0 : index
    %c0_94 = arith.constant 0 : index
    %168 = vector.load %arg6[%c0_93, %c0_94] : memref<128x8xbf16, #tpu.memory_space<vmem>>, vector<128x8xbf16>
    %169 = arith.truncf %167 : vector<4x128xf32> to vector<4x128xbf16>
    %cst_95 = arith.constant dense<0.000000e+00> : vector<4x8xf32>
    %170 = tpu.matmul %169, %168, %cst_95 {dimension_numbers = #tpu.dot_dimension_numbers<[1], [0], [0], [1], [0, 0, 1, 1], [], []>} : vector<4x128xbf16>, vector<128x8xbf16>, vector<4x8xf32> -> vector<4x8xf32>
    %171 = vector.extract_strided_slice %162 {offsets = [6, 0], sizes = [4, 128], strides = [1, 1]} : vector<16x128xf32> to vector<4x128xf32>
    %c0_96 = arith.constant 0 : index
    %c0_97 = arith.constant 0 : index
    %172 = vector.load %arg7[%c0_96, %c0_97] : memref<128x8xbf16, #tpu.memory_space<vmem>>, vector<128x8xbf16>
    %173 = arith.truncf %171 : vector<4x128xf32> to vector<4x128xbf16>
    %cst_98 = arith.constant dense<0.000000e+00> : vector<4x8xf32>
    %174 = tpu.matmul %173, %172, %cst_98 {dimension_numbers = #tpu.dot_dimension_numbers<[1], [0], [0], [1], [0, 0, 1, 1], [], []>} : vector<4x128xbf16>, vector<128x8xbf16>, vector<4x8xf32> -> vector<4x8xf32>
    %175 = vector.extract_strided_slice %166 {offsets = [0, 0], sizes = [1, 16], strides = [1, 1]} : vector<2x16xf32> to vector<1x16xf32>
    %176 = arith.mulf %175, %175 : vector<1x16xf32>
    %177 = vector.extract_strided_slice %166 {offsets = [1, 0], sizes = [1, 16], strides = [1, 1]} : vector<2x16xf32> to vector<1x16xf32>
    %178 = arith.mulf %177, %177 : vector<1x16xf32>
    %179 = arith.addf %176, %178 : vector<1x16xf32>
    %180 = math.rsqrt %179 : vector<1x16xf32>
    %181 = vector.broadcast %180 : vector<1x16xf32> to vector<2x16xf32>
    %182 = arith.mulf %166, %181 : vector<2x16xf32>
    %183 = vector.extract_strided_slice %174 {offsets = [0, 0], sizes = [2, 8], strides = [1, 1]} : vector<4x8xf32> to vector<2x8xf32>
    %184 = arith.mulf %183, %183 : vector<2x8xf32>
    %185 = vector.extract_strided_slice %174 {offsets = [2, 0], sizes = [2, 8], strides = [1, 1]} : vector<4x8xf32> to vector<2x8xf32>
    %186 = arith.mulf %185, %185 : vector<2x8xf32>
    %187 = arith.addf %184, %186 : vector<2x8xf32>
    %188 = math.rsqrt %187 : vector<2x8xf32>
    %189 = tpu.concatenate %188, %188 in 0 : vector<2x8xf32>, vector<2x8xf32> -> vector<4x8xf32>
    %190 = arith.mulf %174, %189 : vector<4x8xf32>
    %c0_99 = arith.constant 0 : index
    %c0_100 = arith.constant 0 : index
    %191 = vector.load %arg8[%c0_99, %c0_100] : memref<8x32xbf16, #tpu.memory_space<vmem>>, vector<8x32xbf16>
    %192 = arith.truncf %170 : vector<4x8xf32> to vector<4x8xbf16>
    %cst_101 = arith.constant dense<0.000000e+00> : vector<4x32xf32>
    %193 = tpu.matmul %192, %191, %cst_101 {dimension_numbers = #tpu.dot_dimension_numbers<[1], [0], [0], [1], [0, 0, 1, 1], [], []>} : vector<4x8xbf16>, vector<8x32xbf16>, vector<4x32xf32> -> vector<4x32xf32>
    %c0_102 = arith.constant 0 : index
    %c0_103 = arith.constant 0 : index
    %194 = vector.load %arg9[%c0_102, %c0_103] : memref<8x32xbf16, #tpu.memory_space<vmem>>, vector<8x32xbf16>
    %195 = arith.truncf %190 : vector<4x8xf32> to vector<4x8xbf16>
    %cst_104 = arith.constant dense<0.000000e+00> : vector<4x32xf32>
    %196 = tpu.matmul %195, %194, %cst_104 {dimension_numbers = #tpu.dot_dimension_numbers<[1], [0], [0], [1], [0, 0, 1, 1], [], []>} : vector<4x8xbf16>, vector<8x32xbf16>, vector<4x32xf32> -> vector<4x32xf32>
    %197 = vector.extract_strided_slice %196 {offsets = [0, 0], sizes = [2, 32], strides = [1, 1]} : vector<4x32xf32> to vector<2x32xf32>
    %198 = vector.extract_strided_slice %193 {offsets = [0, 0], sizes = [2, 32], strides = [1, 1]} : vector<4x32xf32> to vector<2x32xf32>
    %199 = arith.mulf %197, %198 : vector<2x32xf32>
    %200 = vector.extract_strided_slice %196 {offsets = [2, 0], sizes = [2, 32], strides = [1, 1]} : vector<4x32xf32> to vector<2x32xf32>
    %201 = vector.extract_strided_slice %193 {offsets = [2, 0], sizes = [2, 32], strides = [1, 1]} : vector<4x32xf32> to vector<2x32xf32>
    %202 = arith.mulf %200, %201 : vector<2x32xf32>
    %203 = arith.subf %199, %202 : vector<2x32xf32>
    %cst_105 = arith.constant dense<0.000000e+00> : vector<32xf32>
    %204 = vector.multi_reduction <add>, %203, %cst_105 [0] : vector<2x32xf32> to vector<32xf32>
    %205 = vector.shape_cast %204 : vector<32xf32> to vector<1x32xf32>
    %206 = vector.extract_strided_slice %196 {offsets = [0, 0], sizes = [2, 32], strides = [1, 1]} : vector<4x32xf32> to vector<2x32xf32>
    %207 = vector.extract_strided_slice %193 {offsets = [2, 0], sizes = [2, 32], strides = [1, 1]} : vector<4x32xf32> to vector<2x32xf32>
    %208 = arith.mulf %206, %207 : vector<2x32xf32>
    %209 = vector.extract_strided_slice %196 {offsets = [2, 0], sizes = [2, 32], strides = [1, 1]} : vector<4x32xf32> to vector<2x32xf32>
    %210 = vector.extract_strided_slice %193 {offsets = [0, 0], sizes = [2, 32], strides = [1, 1]} : vector<4x32xf32> to vector<2x32xf32>
    %211 = arith.mulf %209, %210 : vector<2x32xf32>
    %212 = arith.addf %208, %211 : vector<2x32xf32>
    %cst_106 = arith.constant dense<0.000000e+00> : vector<32xf32>
    %213 = vector.multi_reduction <add>, %212, %cst_106 [0] : vector<2x32xf32> to vector<32xf32>
    %214 = vector.shape_cast %213 : vector<32xf32> to vector<1x32xf32>
    %215 = arith.mulf %205, %205 : vector<1x32xf32>
    %216 = arith.mulf %214, %214 : vector<1x32xf32>
    %217 = arith.addf %215, %216 : vector<1x32xf32>
    %c0_107 = arith.constant 0 : index
    %c0_108 = arith.constant 0 : index
    %218 = vector.load %arg10[%c0_107, %c0_108] : memref<32x8xbf16, #tpu.memory_space<vmem>>, vector<32x8xbf16>
    %219 = arith.truncf %217 : vector<1x32xf32> to vector<1x32xbf16>
    %cst_109 = arith.constant dense<0.000000e+00> : vector<1x8xf32>
    %220 = tpu.matmul %219, %218, %cst_109 {dimension_numbers = #tpu.dot_dimension_numbers<[1], [0], [0], [1], [0, 0, 1, 1], [], []>} : vector<1x32xbf16>, vector<32x8xbf16>, vector<1x8xf32> -> vector<1x8xf32>
    %221 = math.rsqrt %220 : vector<1x8xf32>
    %cst_110 = arith.constant 5.000000e-01 : f32
    %222 = vector.broadcast %cst_110 : f32 to vector<1x8xf32>
    %223 = arith.mulf %221, %222 : vector<1x8xf32>
    %224 = vector.broadcast %223 : vector<1x8xf32> to vector<4x8xf32>
    %225 = arith.mulf %170, %224 : vector<4x8xf32>
    %cst_111 = arith.constant 0.000000e+00 : f32
    %226 = vector.broadcast %cst_111 : f32 to vector<8x128xf32>
    %c0_112 = arith.constant 0 : index
    %c0_113 = arith.constant 0 : index
    %227 = vector.load %arg17[%c0_112, %c0_113] : memref<8x128xf32, #tpu.memory_space<vmem>>, vector<8x128xf32>
    tpu.vector_store %arg17[%c0_112, %c0_113], %226 {strides = array<i32>} : memref<8x128xf32, #tpu.memory_space<vmem>>, vector<8x128xf32>,
    %c0_114 = arith.constant 0 : index
    %c0_115 = arith.constant 0 : index
    %228 = vector.load %arg17[%c0_114, %c0_115] : memref<8x128xf32, #tpu.memory_space<vmem>>, vector<2x16xf32>
    tpu.vector_store %arg17[%c0_114, %c0_115], %182 {strides = array<i32>} : memref<8x128xf32, #tpu.memory_space<vmem>>, vector<2x16xf32>,
    %c2 = arith.constant 2 : index
    %c0_116 = arith.constant 0 : index
    %229 = vector.load %arg17[%c2, %c0_116] : memref<8x128xf32, #tpu.memory_space<vmem>>, vector<4x8xf32>
    tpu.vector_store %arg17[%c2, %c0_116], %225 {strides = array<i32>} : memref<8x128xf32, #tpu.memory_space<vmem>>, vector<4x8xf32>,
    %c2_117 = arith.constant 2 : index
    %c8 = arith.constant 8 : index
    %230 = vector.load %arg17[%c2_117, %c8] : memref<8x128xf32, #tpu.memory_space<vmem>>, vector<4x8xf32>
    tpu.vector_store %arg17[%c2_117, %c8], %190 {strides = array<i32>} : memref<8x128xf32, #tpu.memory_space<vmem>>, vector<4x8xf32>,
    return
  }
}

</mosaic_0001>

<bundles_post_ra>
// kernel: forward.1
= control target key start
LH: loop header
LB: loop body
LE: loop exit
PB: predicated region body
PF: predicated region fallthrough
CT: control target
= control target key end

     0   :  { %s4373_s0 = inlined_call_operand.vmem [shape: f32[8,128], index: 0, kind: input, shape index: {}]   ;;  %s4374_s1 = inlined_call_operand.vmem [shape: bf16[128,128], index: 1, kind: input, shape index: {}]   ;;  %s4375_s2 = inlined_call_operand.vmem [shape: bf16[128,128], index: 2, kind: input, shape index: {}]   ;;  %s4376_s3 = inlined_call_operand.vmem [shape: bf16[128,128], index: 3, kind: input, shape index: {}]   ;;  %s4377_s4 = inlined_call_operand.vmem [shape: bf16[1,128,128], index: 4, kind: input, shape index: {}]   ;;  %s4378_s5 = inlined_call_operand.vmem [shape: bf16[128,16], index: 5, kind: input, shape index: {}]   ;;  %s4379_s6 = inlined_call_operand.hbm [shape: bf16[128,8], index: 6, kind: input, shape index: {}]   ;;  %s4380_s7 = inlined_call_operand.hbm [shape: bf16[128,8], index: 7, kind: input, shape index: {}]   ;;  %s4381_s8 = inlined_call_operand.hbm [shape: bf16[8,32], index: 8, kind: input, shape index: {}]   ;;  %s4382_s9 = inlined_call_operand.hbm [shape: bf16[8,32], index: 9, kind: input, shape index: {}]   ;;  %s4383_s10 = inlined_call_operand.hbm [shape: bf16[32,8], index: 10, kind: input, shape index: {}]   ;;  %s4384_s11 = inlined_call_operand.hbm [shape: bf16[16,32], index: 11, kind: input, shape index: {}]   ;;  %s4385_s12 = inlined_call_operand.vmem [shape: bf16[48,8], index: 12, kind: input, shape index: {}]   ;;  %s4386_s13 = inlined_call_operand.hbm [shape: bf16[16,64], index: 13, kind: input, shape index: {}]   ;;  %s4387_s14 = inlined_call_operand.vmem [shape: bf16[48,16], index: 14, kind: input, shape index: {}]   ;;  %s4388_s15 = inlined_call_operand.hbm [shape: bf16[16,64], index: 15, kind: input, shape index: {}]   ;;  %s4389_s16 = inlined_call_operand.vmem [shape: bf16[48,16], index: 16, kind: input, shape index: {}]   ;;  %s4390_s17 = inlined_call_operand.vmem [shape: f32[8,128], index: 17, kind: output, shape index: {}]  }
   0x1   :  { %4392 = sst [smem:[#allocation20_spill]] %s4373_s0 }
   0x2   :  { %4393 = sst [smem:[#allocation21_spill]] %s4374_s1 }
   0x3   :  { %22 = vsyncpa [#allocation3], 0 }
   0x4   :  { %23 = vsyncpa [#allocation5], 0 }
   0x5   :  { %24 = vsyncpa [#allocation8], 0 }
   0x6   :  { %25 = vsyncpa [#allocation11], 0 }
   0x7   :  { %26 = vsyncpa [#allocation14], 0  ;;  %s3410_s24 = smov [#allocation4]   ;;  %s3411_s26 = smov [#allocation7]  }
   0x8   :  { %s56_s25 = sshll.u32 %s3410_s24, 4  ;;  %s79_s27 = sshll.u32 %s3411_s26, 4  ;;  %s57_s25 = int_to_ptr.vmem [resolvable:$true] %s56_s25  ;;  %s80_s27 = int_to_ptr.vmem [resolvable:$true] %s79_s27 }
   0x9   :  { %s3248_s28 = scalar_lea.vmem %s57_s25, 1024  ;;  %p3253_p1 = scmp.lt.s32.totalorder %s57_s25, %s57_s25 }
   0xa   :  { %p3249_p0 = scmp.ne.s32.totalorder %s57_s25, %s3248_s28  ;;  %p3254_p2 = scmp.lt.s32.totalorder %s3248_s28, %s3248_s28 }
   0xc   :  { %p3255_p3 = por %p3254_p2, %p3253_p1 }
   0xe   :  { %p3256_p4 = pnand %p3255_p3, %p3249_p0 }
  0x10   :  { %3259 = shalt.err (!%p3256_p4)
}
  0x11   :  { %s3412_s29 = smov 64   ;;  %s3413_s0 = smov 4  }
  0x12   :  { %62 = dma.hbm_to_vmem [thread:$0]  %s4380_s7, 1024, %s57_s25, [#allocation5], %s3412_s29, %s3412_s29, %s3413_s0  }
  0x13   :  { %s3268_s19 = scalar_lea.vmem %s80_s27, 64  ;;  %p3273_p6 = scmp.lt.s32.totalorder %s80_s27, %s80_s27 }
  0x14   :  { %p3269_p5 = scmp.ne.s32.totalorder %s80_s27, %s3268_s19  ;;  %p3274_p7 = scmp.lt.s32.totalorder %s3268_s19, %s3268_s19 }
  0x16   :  { %p3275_p8 = por %p3274_p7, %p3273_p6 }
  0x18   :  { %p3276_p9 = pnand %p3275_p8, %p3269_p5 }
  0x1a   :  { %3279 = shalt.err (!%p3276_p9)
}
  0x1b   :  { %82 = dma.hbm_to_vmem [thread:$0]  %s4382_s9, 64, %s80_s27, [#allocation8]  }
  0x1c   :  { %s3414_s21 = smov [#allocation10]   ;;  %s3415_s23 = smov [#allocation2]  }
  0x1d   :  { %s100_s22 = sshll.u32 %s3414_s21, 4  ;;  %s44_s24 = sshll.u32 %s3415_s23, 4  ;;  %s101_s22 = int_to_ptr.vmem [resolvable:$true] %s100_s22  ;;  %s45_s24 = int_to_ptr.vmem [resolvable:$true] %s44_s24 }
  0x1e   :  { %s3288_s26 = scalar_lea.vmem %s101_s22, 128  ;;  %p3293_p11 = scmp.lt.s32.totalorder %s101_s22, %s101_s22 }
  0x1f   :  { %p3289_p10 = scmp.ne.s32.totalorder %s101_s22, %s3288_s26  ;;  %p3294_p12 = scmp.lt.s32.totalorder %s3288_s26, %s3288_s26 }
  0x21   :  { %p3295_p13 = por %p3294_p12, %p3293_p11 }
  0x23   :  { %p3296_p0 = pnand %p3295_p13, %p3289_p10 }
  0x25   :  { %3299 = shalt.err (!%p3296_p0)
}
  0x26   :  { %106 = dma.hbm_to_vmem [thread:$0]  %s4384_s11, 128, %s101_s22, [#allocation11], %s3412_s29, %s3412_s29, %s3413_s0  }
  0x27   :  { %s3308_s9 = scalar_lea.vmem %s45_s24, 1024  ;;  %p3313_p2 = scmp.lt.s32.totalorder %s45_s24, %s45_s24 }
  0x28   :  { %p3309_p1 = scmp.ne.s32.totalorder %s45_s24, %s3308_s9  ;;  %p3314_p3 = scmp.lt.s32.totalorder %s3308_s9, %s3308_s9 }
  0x2a   :  { %p3315_p4 = por %p3314_p3, %p3313_p2 }
  0x2c   :  { %p3316_p5 = pnand %p3315_p4, %p3309_p1 }
  0x2e   :  { %3319 = shalt.err (!%p3316_p5)
}
  0x2f   :  { %50 = dma.hbm_to_vmem [thread:$0]  %s4379_s6, 1024, %s45_s24, [#allocation3], %s3412_s29, %s3412_s29, %s3413_s0  }
  0x30   :  { %s3416_s30 = smov [#allocation6]   ;;  %s3417_s19 = smov [#allocation9]  }
  0x31   :  { %s69_s18 = sshll.u32 %s3416_s30, 4  ;;  %s88_s1 = sshll.u32 %s3417_s19, 4  ;;  %s70_s18 = int_to_ptr.vmem [resolvable:$true] %s69_s18  ;;  %s89_s1 = int_to_ptr.vmem [resolvable:$true] %s88_s1 }
  0x32   :  { %s3328_s11 = scalar_lea.vmem %s70_s18, 64  ;;  %p3333_p7 = scmp.lt.s32.totalorder %s70_s18, %s70_s18 }
  0x33   :  { %p3329_p6 = scmp.ne.s32.totalorder %s70_s18, %s3328_s11  ;;  %p3334_p8 = scmp.lt.s32.totalorder %s3328_s11, %s3328_s11 }
  0x35   :  { %p3335_p9 = por %p3334_p8, %p3333_p7 }
  0x37   :  { %p3336_p10 = pnand %p3335_p9, %p3329_p6 }
  0x39   :  { %3339 = shalt.err (!%p3336_p10)
}
  0x3a   :  { %72 = dma.hbm_to_vmem [thread:$0]  %s4381_s8, 64, %s70_s18, [#allocation5]  }
  0x3b   :  { %s3348_s22 = scalar_lea.vmem %s89_s1, 256  ;;  %p3353_p12 = scmp.lt.s32.totalorder %s89_s1, %s89_s1 }
  0x3c   :  { %p3349_p11 = scmp.ne.s32.totalorder %s89_s1, %s3348_s22  ;;  %p3354_p13 = scmp.lt.s32.totalorder %s3348_s22, %s3348_s22 }
  0x3e   :  { %p3355_p0 = por %p3354_p13, %p3353_p12 }
  0x40   :  { %p3356_p1 = pnand %p3355_p0, %p3349_p11 }
  0x42   :  { %3359 = shalt.err (!%p3356_p1)
}
  0x43   :  { %94 = dma.hbm_to_vmem [thread:$0]  %s4383_s10, 256, %s89_s1, [#allocation8], %s3412_s29, %s3412_s29, %s3413_s0  }
  0x44   :  { %s3418_s24 = smov [#allocation12]   ;;  %s3419_s7 = smov [#allocation13]  }
  0x45   :  { %s114_s26 = sshll.u32 %s3418_s24, 4  ;;  %s128_s25 = sshll.u32 %s3419_s7, 4  ;;  %s115_s26 = int_to_ptr.vmem [resolvable:$true] %s114_s26  ;;  %s129_s25 = int_to_ptr.vmem [resolvable:$true] %s128_s25 }
  0x46   :  { %s3368_s8 = scalar_lea.vmem %s115_s26, 128  ;;  %p3373_p3 = scmp.lt.s32.totalorder %s115_s26, %s115_s26 }
  0x47   :  { %p3369_p2 = scmp.ne.s32.totalorder %s115_s26, %s3368_s8  ;;  %p3374_p4 = scmp.lt.s32.totalorder %s3368_s8, %s3368_s8 }
  0x49   :  { %p3375_p5 = por %p3374_p4, %p3373_p3 }
  0x4b   :  { %p3376_p6 = pnand %p3375_p5, %p3369_p2 }
  0x4d   :  { %3379 = shalt.err (!%p3376_p6)
}
  0x4e   :  { %120 = dma.hbm_to_vmem [thread:$0]  %s4386_s13, 128, %s115_s26, [#allocation11], %s3412_s29, %s3412_s29, %s3413_s0  }
  0x4f   :  { %s3388_s10 = scalar_lea.vmem %s129_s25, 128  ;;  %p3393_p8 = scmp.lt.s32.totalorder %s129_s25, %s129_s25 }
  0x50   :  { %p3389_p7 = scmp.ne.s32.totalorder %s129_s25, %s3388_s10  ;;  %p3394_p9 = scmp.lt.s32.totalorder %s3388_s10, %s3388_s10 }
  0x52   :  { %p3395_p10 = por %p3394_p9, %p3393_p8 }
  0x54   :  { %p3396_p11 = pnand %p3395_p10, %p3389_p7 }
  0x56   :  { %3399 = shalt.err (!%p3396_p11)
}
  0x57   :  { %134 = dma.hbm_to_vmem [thread:$0]  %s4388_s15, 128, %s129_s25, [#allocation14], %s3412_s29, %s3412_s29, %s3413_s0  }
  0x58   :  { %3400 = dma.done.wait [#allocation3], 1024  }
  0x59   :  { %3401 = vsyncadd [#allocation3], 4294966272 }
  0x5a   :  { %3402 = dma.done.wait [#allocation5], 1088  }
  0x5b   :  { %3403 = vsyncadd [#allocation5], 4294966208 }
  0x5c   :  { %3404 = dma.done.wait [#allocation8], 320  }
  0x5d   :  { %3405 = vsyncadd [#allocation8], 4294966976 }
  0x5e   :  { %3406 = dma.done.wait [#allocation11], 256  }
  0x5f   :  { %3407 = vsyncadd [#allocation11], 4294967040 }
  0x60   :  { %3408 = dma.done.wait [#allocation14], 128  }
  0x61   :  { %3409 = vsyncadd [#allocation14], 4294967168  ;;  %v3420_v0 = vmov 0.0   ;;  %vm3421_vm0 = vmmov 0   ;;  %s4394_s0 = sld [smem:[#allocation21_spill]]  ;;  %v3587_v4 = vld [vmem:[%s4375_s2 + $0x38] sm:$0xff]  }
  0x62   :  { %2584 = vmatprep.subr.bf16.mxu0 %v3420_v0  ;;  %2255 = vst [vmem:[%s4390_s17] sm:$0xff] %v3420_v0  ;;  %2600 = vmatprep.mubr.msk.bf16.mxu0 %vm3421_vm0, %v3420_v0  ;;  %v3600_v6 = vld [vmem:[%s4375_s2 + $0x30] sm:$0xff]   ;;  %v3614_v8 = vld [vmem:[%s4375_s2 + $0x28] sm:$0xff]   ;;  %v3628_v10 = vld [vmem:[%s4375_s2 + $0x20] sm:$0xff]   ;;  %s4395_s21 = sld [smem:[#allocation20_spill]]  ;;  %vm512_vm1 = vcmask 1043456   ;;  %vm502_vm2 = vcmask 64512  }
  0x63   :  { %2604 = vmatprep.subr.bf16.mxu1 %v3420_v0  ;;  %2620 = vmatprep.mubr.msk.bf16.mxu1 %vm3421_vm0, %v3420_v0  ;;  %v3642_v12 = vld [vmem:[%s4375_s2 + $0x18] sm:$0xff]   ;;  %v3658_v15 = vld [vmem:[%s4375_s2 + $0x10] sm:$0xff]   ;;  %v3674_v18 = vld [vmem:[%s4375_s2 + $0x8] sm:$0xff]   ;;  %vm791_vm3 = vcmask 261120   ;;  %vm1011_vm4 = vcmask 130048   ;;  %vm1232_vm5 = vcmask 523264  }
  0x64   :  { %2605 = vmatpush3.bf16.msra.mxu1 %v3587_v4  ;;  %v3666_v16 = vld [vmem:[%s4376_s3 + $0x38] sm:$0xff]   ;;  %v3682_v19 = vld [vmem:[%s4376_s3 + $0x30] sm:$0xff]   ;;  %v3688_v20 = vld [vmem:[%s4375_s2] sm:$0xff]   ;;  %vm2256_vm6 = vcmask 123904   ;;  %vm2055_vm7 = vcmask 1041408   ;;  %vm2159_vm8 = vcmask 254976  }
  0x65   :  { %2606 = vmatprep.subr.bf16.mxu1 %v3420_v0  ;;  %v3698_v21 = vld [vmem:[%s4376_s3 + $0x28] sm:$0xff]   ;;  %v3707_v22 = vld [vmem:[%s4376_s3 + $0x20] sm:$0xff]   ;;  %v3717_v23 = vld [vmem:[%s4376_s3 + $0x18] sm:$0xff]   ;;  %vm2258_vm9 = vcmask 60416   ;;  %vm2264_vm10 = vcmask 126016  }
  0x66   :  { %v3724_v24 = vld [vmem:[%s4376_s3 + $0x10] sm:$0xff]   ;;  %v3731_v25 = vld [vmem:[%s4376_s3 + $0x8] sm:$0xff]   ;;  %v3739_v26 = vld [vmem:[%s4376_s3] sm:$0xff]  }
  0x67   :  { %v3568_v1 = vld [vmem:[%s4394_s0 + $0x38] sm:$0xff]   ;;  %v3574_v2 = vld [vmem:[%s4394_s0 + $0x30] sm:$0xff]   ;;  %v3581_v3 = vld [vmem:[%s4394_s0 + $0x28] sm:$0xff]  }
  0x68   :  { %2585 = vmatpush3.bf16.msra.mxu0 %v3568_v1  ;;  %v3593_v5 = vld [vmem:[%s4394_s0 + $0x20] sm:$0xff]   ;;  %v3607_v7 = vld [vmem:[%s4394_s0 + $0x18] sm:$0xff]   ;;  %2607 = vmatpush3.bf16.msra.mxu1 %v3600_v6  ;;  %v3621_v9 = vld [vmem:[%s4394_s0 + $0x10] sm:$0xff]  }
  0x69   :  { %2586 = vmatprep.subr.bf16.mxu0 %v3420_v0  ;;  %2608 = vmatprep.subr.bf16.mxu1 %v3420_v0  ;;  %v3635_v11 = vld [vmem:[%s4394_s0 + $0x8] sm:$0xff]   ;;  %v3647_v13 = vld [vmem:[%s4394_s0] sm:$0xff]   ;;  %v3746_v27 = vld [vmem:[%s4377_s4 + $0x38] sm:$0xff]  }
  0x6a   :  { %v3652_v14 = vld [vmem:[%s4395_s21] sm:$0xff]  ;;  %v3751_v28 = vld [vmem:[%s4377_s4 + $0x30] sm:$0xff]   ;;  %v3759_v29 = vld [vmem:[%s4377_s4 + $0x28] sm:$0xff]  }
  0x6b   :  { %v179_v17 = vpack.c.bf16 %v3652_v14, %v3652_v14  ;;  %v3135_v43 = vld [vmem:[%s4385_s12] sm:$0xff]   ;;  %v3136_v46 = vld [vmem:[%s4385_s12 + $0x8] sm:$0xff]   ;;  %v3137_v47 = vld [vmem:[%s4385_s12 + $0x10] sm:$0xff]   ;;  %s3422_s12 = smov 8  }
  0x6c   :  { %2587 = vmatpush3.bf16.msra.mxu0 %v3574_v2  ;;  %2609 = vmatpush3.bf16.msra.mxu1 %v3614_v8  ;;  %v3813_v48 = vld [vmem:[%s4377_s4 + $0x20] sm:$0xff]   ;;  %v3820_v49 = vld [vmem:[%s4377_s4 + $0x18] sm:$0xff]   ;;  %v3827_v50 = vld [vmem:[%s4377_s4 + $0x10] sm:$0xff]  }
  0x6d   :  { %2588 = vmatprep.subr.bf16.mxu0 %v3420_v0  ;;  %2610 = vmatprep.subr.bf16.mxu1 %v3420_v0  ;;  %v3834_v51 = vld [vmem:[%s4377_s4 + $0x8] sm:$0xff]   ;;  %v3841_v52 = vld [vmem:[%s4377_s4] sm:$0xff]  }
  0x70   :  { %2589 = vmatpush3.bf16.msra.mxu0 %v3581_v3  ;;  %2611 = vmatpush3.bf16.msra.mxu1 %v3628_v10 }
  0x71   :  { %2590 = vmatprep.subr.bf16.mxu0 %v3420_v0  ;;  %2612 = vmatprep.subr.bf16.mxu1 %v3420_v0 }
  0x74   :  { %2591 = vmatpush3.bf16.msra.mxu0 %v3593_v5  ;;  %2613 = vmatpush3.bf16.msra.mxu1 %v3642_v12 }
  0x75   :  { %2592 = vmatprep.subr.bf16.mxu0 %v3420_v0  ;;  %2614 = vmatprep.subr.bf16.mxu1 %v3420_v0 }
  0x78   :  { %2593 = vmatpush3.bf16.msra.mxu0 %v3607_v7  ;;  %2615 = vmatpush3.bf16.msra.mxu1 %v3658_v15 }
  0x79   :  { %2594 = vmatprep.subr.bf16.mxu0 %v3420_v0  ;;  %2616 = vmatprep.subr.bf16.mxu1 %v3420_v0 }
  0x7c   :  { %2595 = vmatpush3.bf16.msra.mxu0 %v3621_v9  ;;  %2617 = vmatpush3.bf16.msra.mxu1 %v3674_v18 }
  0x7d   :  { %2596 = vmatprep.subr.bf16.mxu0 %v3420_v0  ;;  %2618 = vmatprep.subr.bf16.mxu1 %v3420_v0 }
  0x80   :  { %2597 = vmatpush3.bf16.msra.mxu0 %v3635_v11  ;;  %2619 = vmatpush3.bf16.msra.mxu1 %v3688_v20 }
  0x81   :  { %2598 = vmatprep.subr.bf16.mxu0 %v3420_v0  ;;  %2644 = vmatprep.subr.bf16.mxu1 %v3420_v0 }
  0x83   :  { %2621 = vmatmul.mubr.bf16.vlgmr.msra.gmra.mxu1 %v179_v17 }
  0x84   :  { %2599 = vmatpush3.bf16.msra.mxu0 %v3647_v13  ;;  %2646 = vmatprep.mubr.msk.bf16.mxu1 %vm3421_vm0, %v3420_v0 }
  0x85   :  { %2624 = vmatprep.subr.bf16.mxu0 %v3420_v0 }
  0x87   :  { %2601 = vmatmul.mubr.bf16.vlgmr.msra.gmra.mxu0 %v179_v17 }
  0x88   :  { %2625 = vmatpush3.bf16.msra.mxu0 %v3666_v16  ;;  %2640 = vmatprep.mubr.msk.bf16.mxu0 %vm3421_vm0, %v3420_v0 }
  0x89   :  { %2626 = vmatprep.subr.bf16.mxu0 %v3420_v0 }
  0x8c   :  { %2627 = vmatpush3.bf16.msra.mxu0 %v3682_v19 }
  0x8d   :  { %2628 = vmatprep.subr.bf16.mxu0 %v3420_v0 }
  0x90   :  { %2629 = vmatpush3.bf16.msra.mxu0 %v3698_v21 }
  0x91   :  { %2630 = vmatprep.subr.bf16.mxu0 %v3420_v0 }
  0x94   :  { %2631 = vmatpush3.bf16.msra.mxu0 %v3707_v22 }
  0x95   :  { %2632 = vmatprep.subr.bf16.mxu0 %v3420_v0 }
  0x98   :  { %2633 = vmatpush3.bf16.msra.mxu0 %v3717_v23 }
  0x99   :  { %2634 = vmatprep.subr.bf16.mxu0 %v3420_v0 }
  0x9c   :  { %2635 = vmatpush3.bf16.msra.mxu0 %v3724_v24 }
  0x9d   :  { %2636 = vmatprep.subr.bf16.mxu0 %v3420_v0 }
  0xa0   :  { %2637 = vmatpush3.bf16.msra.mxu0 %v3731_v25 }
  0xa1   :  { %2638 = vmatprep.subr.bf16.mxu0 %v3420_v0 }
  0xa4   :  { %2639 = vmatpush3.bf16.msra.mxu0 %v3739_v26 }
  0xa5   :  { %2678 = vmatprep.subr.bf16.mxu0 %v3746_v27 }
  0xa7   :  { %2641 = vmatmul.mubr.bf16.vlgmr.msra.gmra.mxu0 %v179_v17 }
  0xa8   :  { %2679 = vmatpush3.bf16.msra.mxu0 %v3746_v27 }
  0xa9   :  { %2680 = vmatprep.subr.bf16.mxu0 %v3751_v28 }
  0xac   :  { %2681 = vmatpush3.bf16.msra.mxu0 %v3751_v28 }
  0xad   :  { %2682 = vmatprep.subr.bf16.mxu0 %v3759_v29 }
  0xb0   :  { %2683 = vmatpush3.bf16.msra.mxu0 %v3759_v29 }
  0xb1   :  { %2684 = vmatprep.subr.bf16.mxu0 %v3813_v48 }
  0xb4   :  { %2685 = vmatpush3.bf16.msra.mxu0 %v3813_v48 }
  0xb5   :  { %2686 = vmatprep.subr.bf16.mxu0 %v3820_v49 }
  0xb8   :  { %2687 = vmatpush3.bf16.msra.mxu0 %v3820_v49 }
  0xb9   :  { %2688 = vmatprep.subr.bf16.mxu0 %v3827_v50 }
  0xbc   :  { %2689 = vmatpush3.bf16.msra.mxu0 %v3827_v50 }
  0xbd   :  { %2690 = vmatprep.subr.bf16.mxu0 %v3834_v51 }
  0xc0   :  { %2691 = vmatpush3.bf16.msra.mxu0 %v3834_v51 }
  0xc1   :  { %2692 = vmatprep.subr.bf16.mxu0 %v3841_v52 }
  0xc4   :  { %2693 = vmatpush3.bf16.msra.mxu0 %v3841_v52 }
  0xc5   :  { %2718 = vmatprep.subr.bf16.mxu0 %v3420_v0 }
 0x143   :  { %v3766_v34 = vpop.f32.mrf.mxu1 }
 0x145   :  { %v2622_v35 = vpop.f32.mrf.mxu1 }
 0x147   :  { %v3764_v30 = vpop.f32.mrf.mxu0  ;;  %v369_v36 = vpop.f32.mrf.mxu1 }
 0x149   :  { %v2602_v31 = vpop.f32.mrf.mxu0  ;;  %v2623_v37 = vpop.f32.mrf.mxu1 }
 0x14a   :  { %v478_v37 = vpack.c.bf16 %v3764_v30, %v3652_v14  ;;  %v3146_v14 = vld [vmem:[#allocation10] sm:$0xff]  }
 0x14b   :  { %v265_v32 = vpop.f32.mrf.mxu0 }
 0x14d   :  { %v2603_v33 = vpop.f32.mrf.mxu0 }
 0x167   :  { %v3768_v38 = vpop.f32.mrf.mxu0 }
 0x168   :  { %v479_v39 = vpack.c.bf16 %v3768_v38, %v3766_v34  ;;  %v486_v40 = vpack.c.bf16 %v3768_v38, %v3768_v38 }
 0x169   :  { %v2642_v41 = vpop.f32.mrf.mxu0 }
 0x16a   :  { %v514_v42 = vsel %vm512_vm1, %v486_v40, 0 }
 0x16b   :  { %v473_v44 = vpop.f32.mrf.mxu0  ;;  %2645 = vmatpush3.bf16.msra.mxu1 %v514_v42 }
 0x16c   :  { %2658 = vmatprep.subr.bf16.mxu1 %v3420_v0 }
 0x16d   :  { %v2643_v45 = vpop.f32.mrf.mxu0 }
 0x16e   :  { %2647 = vmatmul.mubr.msk.bf16.vlgmr.msra.gmra.mxu1 %vm502_vm2, %v3135_v43 }
 0x16f   :  { %2650 = vmatprep.mubr.msk.bf16.mxu1 %vm3421_vm0, %v3420_v0  ;;  %2659 = vmatpush3.bf16.msra.mxu1 %v3587_v4 }
 0x170   :  { %2660 = vmatprep.subr.bf16.mxu1 %v3420_v0 }
 0x173   :  { %2661 = vmatpush3.bf16.msra.mxu1 %v3600_v6 }
 0x174   :  { %2662 = vmatprep.subr.bf16.mxu1 %v3420_v0 }
 0x176   :  { %2651 = vmatmul.mubr.msk.bf16.gmra.mxu1 %vm502_vm2, %v3136_v46 }
 0x177   :  { %2654 = vmatprep.mubr.msk.bf16.mxu1 %vm3421_vm0, %v3420_v0  ;;  %2663 = vmatpush3.bf16.msra.mxu1 %v3614_v8 }
 0x178   :  { %2664 = vmatprep.subr.bf16.mxu1 %v3420_v0 }
 0x17b   :  { %2665 = vmatpush3.bf16.msra.mxu1 %v3628_v10 }
 0x17c   :  { %2666 = vmatprep.subr.bf16.mxu1 %v3420_v0 }
 0x17e   :  { %2655 = vmatmul.mubr.msk.bf16.gmra.mxu1 %vm502_vm2, %v3137_v47 }
 0x17f   :  { %2667 = vmatpush3.bf16.msra.mxu1 %v3642_v12  ;;  %2674 = vmatprep.mubr.msk.bf16.mxu1 %vm3421_vm0, %v3420_v0 }
 0x180   :  { %2668 = vmatprep.subr.bf16.mxu1 %v3420_v0 }
 0x183   :  { %2669 = vmatpush3.bf16.msra.mxu1 %v3658_v15 }
 0x184   :  { %2670 = vmatprep.subr.bf16.mxu1 %v3420_v0 }
 0x187   :  { %2671 = vmatpush3.bf16.msra.mxu1 %v3674_v18 }
 0x188   :  { %2672 = vmatprep.subr.bf16.mxu1 %v3420_v0 }
 0x18b   :  { %2673 = vmatpush3.bf16.msra.mxu1 %v3688_v20 }
 0x18c   :  { %2698 = vmatprep.subr.bf16.mxu1 %v3420_v0 }
 0x22e   :  { %v3846_v53 = vpop.f32.mrf.mxu1 }
 0x230   :  { %v2648_v54 = vpop.f32.mrf.mxu1 }
 0x232   :  { %v3848_v55 = vpop.f32.mrf.mxu1 }
 0x234   :  { %v2649_v56 = vpop.f32.mrf.mxu1 }
 0x236   :  { %v558_v57 = vpop.f32.mrf.mxu1 }
 0x237   :  { %v573_v60 = vmul.f32 %v558_v57, %v3846_v53 }
 0x238   :  { %v2652_v58 = vpop.f32.mrf.mxu1 }
 0x23a   :  { %v561_v59 = vpop.f32.mrf.mxu1 }
 0x23b   :  { %v574_v61 = vmul.f32 %v561_v59, %v3848_v55  ;;  %v637_v62 = vpack.c.bf16 %v561_v59, %v558_v57 }
 0x23c   :  { %v2653_v63 = vpop.f32.mrf.mxu1 }
 0x23d   :  { %v575_v17 = vpack.c.bf16 %v574_v61, %v573_v60  ;;  %2694 = vmatprep.mubr.bf16.mxu0 %v637_v62 }
 0x23e   :  { %v3852_v31 = vpop.f32.mrf.mxu1 }
 0x23f   :  { %2675 = vmatmul.mubr.bf16.vlgmr.msra.gmra.mxu1 %v575_v17 }
 0x240   :  { %v2656_v32 = vpop.f32.mrf.mxu1  ;;  %2699 = vmatpush3.bf16.msra.mxu1 %v3587_v4  ;;  %2714 = vmatprep.mubr.msk.bf16.mxu1 %vm3421_vm0, %v3420_v0 }
 0x241   :  { %2700 = vmatprep.subr.bf16.mxu1 %v3420_v0 }
 0x242   :  { %v3858_v33 = vpop.f32.mrf.mxu1 }
 0x243   :  { %v638_v35 = vpack.c.bf16 %v3858_v33, %v3852_v31 }
 0x244   :  { %v2657_v36 = vpop.f32.mrf.mxu1  ;;  %2701 = vmatpush3.bf16.msra.mxu1 %v3600_v6 }
 0x245   :  { %2695 = vmatmul.mubr.bf16.vlgmr.msra.gmra.mxu0 %v638_v35  ;;  %2702 = vmatprep.subr.bf16.mxu1 %v3420_v0 }
 0x246   :  { %2719 = vmatpush3.bf16.msra.mxu0 %v479_v39  ;;  %2722 = vmatprep.mubr.msk.bf16.mxu0 %vm3421_vm0, %v3420_v0 }
 0x247   :  { %2720 = vmatprep.subr.bf16.mxu0 %v3420_v0 }
 0x248   :  { %2703 = vmatpush3.bf16.msra.mxu1 %v3614_v8 }
 0x249   :  { %2704 = vmatprep.subr.bf16.mxu1 %v3420_v0 }
 0x24a   :  { %2721 = vmatpush3.bf16.msra.mxu0 %v478_v37 }
 0x24b   :  { %2726 = vmatprep.subr.bf16.mxu0 %v3420_v0 }
 0x24c   :  { %2705 = vmatpush3.bf16.msra.mxu1 %v3628_v10 }
 0x24d   :  { %2706 = vmatprep.subr.bf16.mxu1 %v3420_v0  ;;  %2723 = vmatmul.mubr.msk.bf16.vlgmr.msra.gmra.mxu0 %vm791_vm3, %v3146_v14 }
 0x24e   :  { %2727 = vmatpush3.bf16.msra.mxu0 %v3568_v1  ;;  %2742 = vmatprep.mubr.msk.bf16.mxu0 %vm3421_vm0, %v3420_v0 }
 0x24f   :  { %2728 = vmatprep.subr.bf16.mxu0 %v3420_v0 }
 0x250   :  { %2707 = vmatpush3.bf16.msra.mxu1 %v3642_v12 }
 0x251   :  { %2708 = vmatprep.subr.bf16.mxu1 %v3420_v0 }
 0x252   :  { %2729 = vmatpush3.bf16.msra.mxu0 %v3574_v2 }
 0x253   :  { %2730 = vmatprep.subr.bf16.mxu0 %v3420_v0 }
 0x254   :  { %2709 = vmatpush3.bf16.msra.mxu1 %v3658_v15 }
 0x255   :  { %2710 = vmatprep.subr.bf16.mxu1 %v3420_v0 }
 0x256   :  { %2731 = vmatpush3.bf16.msra.mxu0 %v3581_v3 }
 0x257   :  { %2732 = vmatprep.subr.bf16.mxu0 %v3420_v0 }
 0x258   :  { %2711 = vmatpush3.bf16.msra.mxu1 %v3674_v18 }
 0x259   :  { %2712 = vmatprep.subr.bf16.mxu1 %v3420_v0 }
 0x25a   :  { %2733 = vmatpush3.bf16.msra.mxu0 %v3593_v5 }
 0x25b   :  { %2734 = vmatprep.subr.bf16.mxu0 %v3420_v0 }
 0x25c   :  { %2713 = vmatpush3.bf16.msra.mxu1 %v3688_v20 }
 0x25d   :  { %2746 = vmatprep.subr.bf16.mxu1 %v3420_v0 }
 0x25e   :  { %2735 = vmatpush3.bf16.msra.mxu0 %v3607_v7 }
 0x25f   :  { %2736 = vmatprep.subr.bf16.mxu0 %v3420_v0 }
 0x262   :  { %2737 = vmatpush3.bf16.msra.mxu0 %v3621_v9 }
 0x263   :  { %2738 = vmatprep.subr.bf16.mxu0 %v3420_v0 }
 0x266   :  { %2739 = vmatpush3.bf16.msra.mxu0 %v3635_v11 }
 0x267   :  { %2740 = vmatprep.subr.bf16.mxu0 %v3420_v0 }
 0x26a   :  { %2741 = vmatpush3.bf16.msra.mxu0 %v3647_v13 }
 0x26b   :  { %2766 = vmatprep.subr.bf16.mxu0 %v3420_v0 }
 0x2ff   :  { %v610_v1 = vpop.f32.mrf.mxu1 }
 0x300   :  { %3181 = vtanh.f32 %v610_v1 }
 0x301   :  { %v2676_v2 = vpop.f32.mrf.mxu1 }
 0x303   :  { %v613_v3 = vpop.f32.mrf.mxu1 }
 0x305   :  { %v2677_v5 = vpop.f32.mrf.mxu1  ;;  %v2696_v30 = vpop.f32.mrf.mxu0 }
 0x307   :  { %v721_v7 = vpop.f32.mrf.mxu0 }
 0x308   :  { %v736_v9 = vmul.f32 %v721_v7, %v3846_v53 }
 0x309   :  { %v2697_v34 = vpop.f32.mrf.mxu0 }
 0x30b   :  { %v724_v38 = vpop.f32.mrf.mxu0 }
 0x30c   :  { %v737_v39 = vmul.f32 %v724_v38, %v3848_v55 }
 0x30d   :  { %v829_v11 = vpop.f32.mrf.mxu0  ;;  %v3182_v47 = vpop.eup %3181 }
 0x30e   :  { %v738_v40 = vpack.c.bf16 %v737_v39, %v736_v9  ;;  %v619_v54 = vmul.f32 %v3182_v47, %v3852_v31 }
 0x30f   :  { %v2724_v13 = vpop.f32.mrf.mxu0 }
 0x310   :  { %2715 = vmatmul.mubr.bf16.vlgmr.msra.gmra.mxu1 %v738_v40 }
 0x311   :  { %2747 = vmatpush3.bf16.msra.mxu1 %v3587_v4  ;;  %2762 = vmatprep.mubr.msk.bf16.mxu1 %vm3421_vm0, %v3420_v0  ;;  %v832_v41 = vpop.f32.mrf.mxu0 }
 0x312   :  { %2748 = vmatprep.subr.bf16.mxu1 %v3420_v0 }
 0x313   :  { %v2725_v42 = vpop.f32.mrf.mxu0 }
 0x315   :  { %2749 = vmatpush3.bf16.msra.mxu1 %v3600_v6 }
 0x316   :  { %2750 = vmatprep.subr.bf16.mxu1 %v3420_v0 }
 0x319   :  { %2751 = vmatpush3.bf16.msra.mxu1 %v3614_v8 }
 0x31a   :  { %2752 = vmatprep.subr.bf16.mxu1 %v3420_v0 }
 0x31d   :  { %2753 = vmatpush3.bf16.msra.mxu1 %v3628_v10 }
 0x31e   :  { %2754 = vmatprep.subr.bf16.mxu1 %v3420_v0 }
 0x321   :  { %2755 = vmatpush3.bf16.msra.mxu1 %v3642_v12 }
 0x322   :  { %2756 = vmatprep.subr.bf16.mxu1 %v3420_v0 }
 0x325   :  { %2757 = vmatpush3.bf16.msra.mxu1 %v3658_v15 }
 0x326   :  { %2758 = vmatprep.subr.bf16.mxu1 %v3420_v0 }
 0x329   :  { %2759 = vmatpush3.bf16.msra.mxu1 %v3674_v18 }
 0x32a   :  { %2760 = vmatprep.subr.bf16.mxu1 %v3420_v0 }
 0x32d   :  { %2761 = vmatpush3.bf16.msra.mxu1 %v3688_v20 }
 0x32e   :  { %2786 = vmatprep.subr.bf16.mxu1 %v3420_v0 }
 0x3d0   :  { %v773_v43 = vpop.f32.mrf.mxu1 }
 0x3d1   :  { %3183 = vtanh.f32 %v773_v43 }
 0x3d2   :  { %v2716_v44 = vpop.f32.mrf.mxu1  ;;  %3185 = vtanh.f32 %v613_v3 }
 0x3d4   :  { %v776_v45 = vpop.f32.mrf.mxu1 }
 0x3d5   :  { %3187 = vtanh.f32 %v776_v45 }
 0x3d6   :  { %v2717_v46 = vpop.f32.mrf.mxu1 }
 0x3de   :  { %v3184_v53 = vpop.eup %3183 }
 0x3df   :  { %v782_v55 = vmul.f32 %v3184_v53, %v2696_v30  ;;  %v3186_v56 = vpop.eup %3185 }
 0x3e0   :  { %v620_v60 = vmul.f32 %v3186_v56, %v3858_v33 }
 0x3e1   :  { %v784_v57 = vadd.f32 %v782_v55, %v619_v54 }
 0x3e2   :  { %v3188_v58 = vpop.eup %3187 }
 0x3e3   :  { %v830_v59 = vadd.f32 %v829_v11, %v784_v57  ;;  %v783_v61 = vmul.f32 %v3188_v58, %v2697_v34  ;;  %v3147_v57 = vld [vmem:[%s4387_s14] sm:$0xff]   ;;  %v3148_v58 = vld [vmem:[%s4387_s14 + $0x8] sm:$0xff]  }
 0x3e5   :  { %v836_v62 = vmax.f32 %v830_v59, 0.0  ;;  %v785_v63 = vadd.f32 %v783_v61, %v620_v60  ;;  %v3149_v59 = vld [vmem:[%s4387_s14 + $0x10] sm:$0xff]   ;;  %v4016_v60 = vld [vmem:[%s4390_s17] sm:$0xff] }
 0x3e7   :  { %v833_v17 = vadd.f32 %v832_v41, %v785_v63  ;;  %838 = vadd.xlane.f32.xlu0 %v836_v62 }
 0x3e9   :  { %v837_v32 = vmax.f32 %v833_v17, 0.0 }
 0x3eb   :  { %840 = vadd.xlane.f32.xlu0 %v837_v32 }
 0x470   :  { %v839_v35 = vpop.xlane.xlu0 %838 }
 0x471   :  { %v843_v36 = vmul.f32 0.0078125, %v839_v35 }
 0x473   :  { %v845_v37 = vsub.f32 %v836_v62, %v843_v36 }
 0x474   :  { %v841_v14 = vpop.xlane.xlu0 %840 }
 0x475   :  { %v844_v1 = vmul.f32 0.0078125, %v841_v14  ;;  %v847_v31 = vmul.f32 %v845_v37, %v845_v37 }
 0x477   :  { %v846_v2 = vsub.f32 %v837_v32, %v844_v1  ;;  %849 = vadd.xlane.f32.xlu1 %v847_v31 }
 0x479   :  { %v848_v3 = vmul.f32 %v846_v2, %v846_v2 }
 0x47b   :  { %851 = vadd.xlane.f32.xlu1 %v848_v3 }
 0x500   :  { %v850_v5 = vpop.xlane.xlu1 %849 }
 0x501   :  { %v853_v30 = vmul.f32 0.0078125, %v850_v5 }
 0x503   :  { %v855_v33 = vadd.f32 1e-05, %v853_v30 }
 0x504   :  { %v852_v7 = vpop.xlane.xlu1 %851 }
 0x505   :  { %v854_v34 = vmul.f32 0.0078125, %v852_v7  ;;  %3189 = vrsqrt.f32 %v855_v33  ;;  %v4082_v7 = vld [vmem:[%s4375_s2 + $0x28] sm:$0xff]  }
 0x507   :  { %v856_v38 = vadd.f32 1e-05, %v854_v34 }
 0x509   :  { %3191 = vrsqrt.f32 %v856_v38 }
 0x512   :  { %v3190_v9 = vpop.eup %3189 }
 0x513   :  { %v859_v40 = vmul.f32 %v3190_v9, %v845_v37 }
 0x516   :  { %v3192_v39 = vpop.eup %3191 }
 0x517   :  { %v860_v11 = vmul.f32 %v3192_v39, %v846_v2 }
 0x519   :  { %v3926_v13 = vpack.c.bf16 %v860_v11, %v859_v40 }
 0x51b   :  { %2743 = vmatmul.mubr.bf16.vlgmr.msra.gmra.mxu0 %v3926_v13  ;;  %2763 = vmatmul.mubr.bf16.vlgmr.msra.gmra.mxu1 %v3926_v13 }
 0x51c   :  { %2767 = vmatpush3.bf16.msra.mxu0 %v3666_v16  ;;  %2782 = vmatprep.mubr.msk.bf16.mxu0 %vm3421_vm0, %v3420_v0 }
 0x51d   :  { %2768 = vmatprep.subr.bf16.mxu0 %v3420_v0  ;;  %2788 = vmatprep.mubr.msk.bf16.mxu1 %vm3421_vm0, %v3420_v0 }
 0x520   :  { %2769 = vmatpush3.bf16.msra.mxu0 %v3682_v19 }
 0x521   :  { %2770 = vmatprep.subr.bf16.mxu0 %v3420_v0 }
 0x524   :  { %2771 = vmatpush3.bf16.msra.mxu0 %v3698_v21 }
 0x525   :  { %2772 = vmatprep.subr.bf16.mxu0 %v3420_v0 }
 0x528   :  { %2773 = vmatpush3.bf16.msra.mxu0 %v3707_v22 }
 0x529   :  { %2774 = vmatprep.subr.bf16.mxu0 %v3420_v0 }
 0x52c   :  { %2775 = vmatpush3.bf16.msra.mxu0 %v3717_v23 }
 0x52d   :  { %2776 = vmatprep.subr.bf16.mxu0 %v3420_v0 }
 0x530   :  { %2777 = vmatpush3.bf16.msra.mxu0 %v3724_v24 }
 0x531   :  { %2778 = vmatprep.subr.bf16.mxu0 %v3420_v0 }
 0x534   :  { %2779 = vmatpush3.bf16.msra.mxu0 %v3731_v25 }
 0x535   :  { %2780 = vmatprep.subr.bf16.mxu0 %v3420_v0 }
 0x538   :  { %2781 = vmatpush3.bf16.msra.mxu0 %v3739_v26 }
 0x539   :  { %2820 = vmatprep.subr.bf16.mxu0 %v3746_v27 }
 0x53b   :  { %2783 = vmatmul.mubr.bf16.vlgmr.msra.gmra.mxu0 %v3926_v13 }
 0x53c   :  { %2821 = vmatpush3.bf16.msra.mxu0 %v3746_v27 }
 0x53d   :  { %2822 = vmatprep.subr.bf16.mxu0 %v3751_v28 }
 0x540   :  { %2823 = vmatpush3.bf16.msra.mxu0 %v3751_v28 }
 0x541   :  { %2824 = vmatprep.subr.bf16.mxu0 %v3759_v29 }
 0x544   :  { %2825 = vmatpush3.bf16.msra.mxu0 %v3759_v29 }
 0x545   :  { %2826 = vmatprep.subr.bf16.mxu0 %v3813_v48 }
 0x548   :  { %2827 = vmatpush3.bf16.msra.mxu0 %v3813_v48 }
 0x549   :  { %2828 = vmatprep.subr.bf16.mxu0 %v3820_v49 }
 0x54c   :  { %2829 = vmatpush3.bf16.msra.mxu0 %v3820_v49 }
 0x54d   :  { %2830 = vmatprep.subr.bf16.mxu0 %v3827_v50 }
 0x550   :  { %2831 = vmatpush3.bf16.msra.mxu0 %v3827_v50 }
 0x551   :  { %2832 = vmatprep.subr.bf16.mxu0 %v3834_v51 }
 0x554   :  { %2833 = vmatpush3.bf16.msra.mxu0 %v3834_v51 }
 0x555   :  { %2834 = vmatprep.subr.bf16.mxu0 %v3841_v52 }
 0x558   :  { %2835 = vmatpush3.bf16.msra.mxu0 %v3841_v52 }
 0x559   :  { %2860 = vmatprep.subr.bf16.mxu0 %v3420_v0 }
 0x5db   :  { %v3967_v16 = vpop.f32.mrf.mxu0  ;;  %v3969_v19 = vpop.f32.mrf.mxu1 }
 0x5dd   :  { %v2744_v21 = vpop.f32.mrf.mxu0  ;;  %v2764_v22 = vpop.f32.mrf.mxu1 }
 0x5de   :  { %v3226_v21 = vld [vmem:[%s4394_s0 + $0x20] sm:$0xff]   ;;  %v3227_v22 = vld [vmem:[%s4394_s0 + $0x18] sm:$0xff]  }
 0x5df   :  { %v3971_v41 = vpop.f32.mrf.mxu0  ;;  %v3973_v42 = vpop.f32.mrf.mxu1 }
 0x5e0   :  { %v987_v43 = vpack.c.bf16 %v3971_v41, %v3967_v16  ;;  %v988_v44 = vpack.c.bf16 %v3973_v42, %v3969_v19  ;;  %v3225_v19 = vld [vmem:[%s4394_s0 + $0x28] sm:$0xff]   ;;  %v3228_v41 = vld [vmem:[%s4394_s0 + $0x10] sm:$0xff]  }
 0x5e1   :  { %v2745_v45 = vpop.f32.mrf.mxu0  ;;  %v2765_v46 = vpop.f32.mrf.mxu1  ;;  %v3229_v42 = vld [vmem:[%s4394_s0 + $0x8] sm:$0xff]  }
 0x5fb   :  { %v978_v47 = vpop.f32.mrf.mxu0 }
 0x5fd   :  { %v2784_v53 = vpop.f32.mrf.mxu0 }
 0x5ff   :  { %v981_v54 = vpop.f32.mrf.mxu0 }
 0x600   :  { %v989_v55 = vpack.c.bf16 %v981_v54, %v978_v47 }
 0x601   :  { %v2785_v56 = vpop.f32.mrf.mxu0 }
 0x602   :  { %2787 = vmatpush3.bf16.msra.mxu1 %v989_v55 }
 0x603   :  { %2800 = vmatprep.subr.bf16.mxu1 %v3420_v0 }
 0x605   :  { %2789 = vmatmul.mubr.msk.bf16.vlgmr.msra.gmra.mxu1 %vm1011_vm4, %v3147_v57 }
 0x606   :  { %2792 = vmatprep.mubr.msk.bf16.mxu1 %vm3421_vm0, %v3420_v0  ;;  %2801 = vmatpush3.bf16.msra.mxu1 %v3587_v4 }
 0x607   :  { %2802 = vmatprep.subr.bf16.mxu1 %v3420_v0 }
 0x60a   :  { %2803 = vmatpush3.bf16.msra.mxu1 %v3600_v6 }
 0x60b   :  { %2804 = vmatprep.subr.bf16.mxu1 %v3420_v0 }
 0x60d   :  { %2793 = vmatmul.mubr.msk.bf16.gmra.mxu1 %vm1011_vm4, %v3148_v58 }
 0x60e   :  { %2796 = vmatprep.mubr.msk.bf16.mxu1 %vm3421_vm0, %v3420_v0  ;;  %2805 = vmatpush3.bf16.msra.mxu1 %v3614_v8 }
 0x60f   :  { %2806 = vmatprep.subr.bf16.mxu1 %v3420_v0 }
 0x612   :  { %2807 = vmatpush3.bf16.msra.mxu1 %v3628_v10 }
 0x613   :  { %2808 = vmatprep.subr.bf16.mxu1 %v3420_v0 }
 0x615   :  { %2797 = vmatmul.mubr.msk.bf16.gmra.mxu1 %vm1011_vm4, %v3149_v59 }
 0x616   :  { %2809 = vmatpush3.bf16.msra.mxu1 %v3642_v12  ;;  %2816 = vmatprep.mubr.msk.bf16.mxu1 %vm3421_vm0, %v3420_v0 }
 0x617   :  { %2810 = vmatprep.subr.bf16.mxu1 %v3420_v0 }
 0x61a   :  { %2811 = vmatpush3.bf16.msra.mxu1 %v3658_v15 }
 0x61b   :  { %2812 = vmatprep.subr.bf16.mxu1 %v3420_v0 }
 0x61e   :  { %2813 = vmatpush3.bf16.msra.mxu1 %v3674_v18 }
 0x61f   :  { %2814 = vmatprep.subr.bf16.mxu1 %v3420_v0 }
 0x622   :  { %2815 = vmatpush3.bf16.msra.mxu1 %v3688_v20 }
 0x623   :  { %2840 = vmatprep.subr.bf16.mxu1 %v4016_v60 }
 0x6c5   :  { %v4019_v61 = vpop.f32.mrf.mxu1 }
 0x6c7   :  { %v2790_v62 = vpop.f32.mrf.mxu1 }
 0x6c9   :  { %v4021_v63 = vpop.f32.mrf.mxu1 }
 0x6cb   :  { %v2791_v17 = vpop.f32.mrf.mxu1 }
 0x6cd   :  { %v1063_v32 = vpop.f32.mrf.mxu1 }
 0x6ce   :  { %v1078_v0 = vmul.f32 %v1063_v32, %v4019_v61 }
 0x6cf   :  { %v2794_v35 = vpop.f32.mrf.mxu1 }
 0x6d1   :  { %v1066_v36 = vpop.f32.mrf.mxu1 }
 0x6d2   :  { %v1079_v37 = vmul.f32 %v1066_v36, %v4021_v63  ;;  %v1126_v14 = vpack.c.bf16 %v1066_v36, %v1063_v32 }
 0x6d3   :  { %v2795_v1 = vpop.f32.mrf.mxu1 }
 0x6d4   :  { %v1080_v31 = vpack.c.bf16 %v1079_v37, %v1078_v0  ;;  %2836 = vmatprep.mubr.bf16.mxu0 %v1126_v14 }
 0x6d5   :  { %v4025_v2 = vpop.f32.mrf.mxu1 }
 0x6d6   :  { %2817 = vmatmul.mubr.bf16.vlgmr.msra.gmra.mxu1 %v1080_v31 }
 0x6d7   :  { %v2798_v3 = vpop.f32.mrf.mxu1  ;;  %2841 = vmatpush3.bf16.msra.mxu1 %v3587_v4  ;;  %2856 = vmatprep.mubr.msk.bf16.mxu1 %vm3421_vm0, %v4016_v60  ;;  %v3150_v4 = vld [vmem:[#allocation12] sm:$0xff]  }
 0x6d8   :  { %2842 = vmatprep.subr.bf16.mxu1 %v4016_v60 }
 0x6d9   :  { %v4031_v5 = vpop.f32.mrf.mxu1 }
 0x6da   :  { %v1127_v30 = vpack.c.bf16 %v4031_v5, %v4025_v2 }
 0x6db   :  { %v2799_v33 = vpop.f32.mrf.mxu1  ;;  %2843 = vmatpush3.bf16.msra.mxu1 %v3600_v6  ;;  %v4066_v6 = vld [vmem:[%s4375_s2 + $0x38] sm:$0xff]  }
 0x6dc   :  { %2837 = vmatmul.mubr.bf16.vlgmr.msra.gmra.mxu0 %v1127_v30  ;;  %2844 = vmatprep.subr.bf16.mxu1 %v4016_v60 }
 0x6dd   :  { %2861 = vmatpush3.bf16.msra.mxu0 %v989_v55  ;;  %2868 = vmatprep.mubr.msk.bf16.mxu0 %vm3421_vm0, %v4016_v60 }
 0x6de   :  { %2862 = vmatprep.subr.bf16.mxu0 %v4016_v60 }
 0x6df   :  { %2845 = vmatpush3.bf16.msra.mxu1 %v3614_v8  ;;  %v4075_v8 = vld [vmem:[%s4375_s2 + $0x30] sm:$0xff]  }
 0x6e0   :  { %2846 = vmatprep.subr.bf16.mxu1 %v4016_v60 }
 0x6e1   :  { %2863 = vmatpush3.bf16.msra.mxu0 %v988_v44 }
 0x6e2   :  { %2864 = vmatprep.subr.bf16.mxu0 %v4016_v60 }
 0x6e3   :  { %2847 = vmatpush3.bf16.msra.mxu1 %v3628_v10 }
 0x6e4   :  { %2848 = vmatprep.subr.bf16.mxu1 %v4016_v60 }
 0x6e5   :  { %2865 = vmatpush3.bf16.msra.mxu0 %v987_v43  ;;  %v3230_v43 = vld [vmem:[%s4394_s0] sm:$0xff]  }
 0x6e6   :  { %2866 = vmatprep.subr.bf16.mxu0 %v4016_v60 }
 0x6e7   :  { %2849 = vmatpush3.bf16.msra.mxu1 %v3642_v12 }
 0x6e8   :  { %2850 = vmatprep.subr.bf16.mxu1 %v4016_v60 }
 0x6e9   :  { %2867 = vmatpush3.bf16.msra.mxu0 %v3926_v13 }
 0x6ea   :  { %2892 = vmatprep.subr.bf16.mxu0 %v4016_v60 }
 0x6eb   :  { %2851 = vmatpush3.bf16.msra.mxu1 %v3658_v15 }
 0x6ec   :  { %2852 = vmatprep.subr.bf16.mxu1 %v4016_v60  ;;  %2869 = vmatmul.mubr.msk.bf16.vlgmr.msra.gmra.mxu0 %vm1232_vm5, %v3150_v4 }
 0x6ed   :  { %2893 = vmatpush3.bf16.msra.mxu0 %v4066_v6  ;;  %2908 = vmatprep.mubr.msk.bf16.mxu0 %vm3421_vm0, %v4016_v60 }
 0x6ee   :  { %2894 = vmatprep.subr.bf16.mxu0 %v4016_v60 }
 0x6ef   :  { %2853 = vmatpush3.bf16.msra.mxu1 %v3674_v18 }
 0x6f0   :  { %2854 = vmatprep.subr.bf16.mxu1 %v4016_v60 }
 0x6f1   :  { %2895 = vmatpush3.bf16.msra.mxu0 %v4075_v8 }
 0x6f2   :  { %2896 = vmatprep.subr.bf16.mxu0 %v4016_v60 }
 0x6f3   :  { %2855 = vmatpush3.bf16.msra.mxu1 %v3688_v20 }
 0x6f4   :  { %2872 = vmatprep.subr.bf16.mxu1 %v4016_v60 }
 0x6f5   :  { %2897 = vmatpush3.bf16.msra.mxu0 %v4082_v7 }
 0x6f6   :  { %2898 = vmatprep.subr.bf16.mxu0 %v4016_v60 }
 0x6f9   :  { %2899 = vmatpush3.bf16.msra.mxu0 %v3628_v10 }
 0x6fa   :  { %2900 = vmatprep.subr.bf16.mxu0 %v4016_v60 }
 0x6fd   :  { %2901 = vmatpush3.bf16.msra.mxu0 %v3642_v12 }
 0x6fe   :  { %2902 = vmatprep.subr.bf16.mxu0 %v4016_v60 }
 0x701   :  { %2903 = vmatpush3.bf16.msra.mxu0 %v3658_v15 }
 0x702   :  { %2904 = vmatprep.subr.bf16.mxu0 %v4016_v60 }
 0x705   :  { %2905 = vmatpush3.bf16.msra.mxu0 %v3674_v18  ;;  %v3223_v18 = vld [vmem:[%s4394_s0 + $0x38] sm:$0xff]  }
 0x706   :  { %2906 = vmatprep.subr.bf16.mxu0 %v4016_v60 }
 0x709   :  { %2907 = vmatpush3.bf16.msra.mxu0 %v3688_v20  ;;  %v3224_v20 = vld [vmem:[%s4394_s0 + $0x30] sm:$0xff]  }
 0x70a   :  { %2932 = vmatprep.subr.bf16.mxu0 %v4016_v60 }
 0x796   :  { %v1115_v34 = vpop.f32.mrf.mxu1 }
 0x797   :  { %3193 = vtanh.f32 %v1115_v34 }
 0x798   :  { %v2818_v10 = vpop.f32.mrf.mxu1 }
 0x79a   :  { %v1118_v38 = vpop.f32.mrf.mxu1 }
 0x79c   :  { %v2819_v9 = vpop.f32.mrf.mxu1  ;;  %v2838_v39 = vpop.f32.mrf.mxu0 }
 0x79e   :  { %v1162_v12 = vpop.f32.mrf.mxu0 }
 0x79f   :  { %v1177_v15 = vmul.f32 %v1162_v12, %v4019_v61 }
 0x7a0   :  { %v2839_v40 = vpop.f32.mrf.mxu0 }
 0x7a2   :  { %v1165_v11 = vpop.f32.mrf.mxu0 }
 0x7a3   :  { %v1178_v13 = vmul.f32 %v1165_v11, %v4021_v63 }
 0x7a4   :  { %v3194_v57 = vpop.eup %3193 }
 0x7a5   :  { %v1179_v16 = vpack.c.bf16 %v1178_v13, %v1177_v15  ;;  %v1124_v59 = vmul.f32 %v3194_v57, %v4025_v2 }
 0x7a7   :  { %2857 = vmatmul.mubr.bf16.vlgmr.msra.gmra.mxu1 %v1179_v16 }
 0x7a8   :  { %2873 = vmatpush3.bf16.msra.mxu1 %v3223_v18  ;;  %2888 = vmatprep.mubr.msk.bf16.mxu1 %vm3421_vm0, %v4016_v60 }
 0x7a9   :  { %2874 = vmatprep.subr.bf16.mxu1 %v4016_v60 }
 0x7ac   :  { %2875 = vmatpush3.bf16.msra.mxu1 %v3224_v20  ;;  %v1270_v44 = vpop.f32.mrf.mxu0  ;;  %v3231_v20 = vld [vmem:[%s4376_s3 + $0x38] sm:$0xff]  }
 0x7ad   :  { %2876 = vmatprep.subr.bf16.mxu1 %v4016_v60 }
 0x7ae   :  { %v2870_v45 = vpop.f32.mrf.mxu0 }
 0x7af   :  { %v3152_v45 = vld [vmem:[%s4389_s16 + $0x8] sm:$0xff]  }
 0x7b0   :  { %2877 = vmatpush3.bf16.msra.mxu1 %v3225_v19  ;;  %v1273_v46 = vpop.f32.mrf.mxu0  ;;  %v3232_v19 = vld [vmem:[%s4376_s3 + $0x30] sm:$0xff]  }
 0x7b1   :  { %2878 = vmatprep.subr.bf16.mxu1 %v4016_v60 }
 0x7b2   :  { %v2871_v47 = vpop.f32.mrf.mxu0 }
 0x7b3   :  { %v3235_v47 = vld [vmem:[%s4375_s2 + $0x20] sm:$0xff]  }
 0x7b4   :  { %2879 = vmatpush3.bf16.msra.mxu1 %v3226_v21  ;;  %v3233_v21 = vld [vmem:[%s4376_s3 + $0x28] sm:$0xff]  }
 0x7b5   :  { %2880 = vmatprep.subr.bf16.mxu1 %v4016_v60 }
 0x7b8   :  { %2881 = vmatpush3.bf16.msra.mxu1 %v3227_v22  ;;  %v3234_v22 = vld [vmem:[%s4376_s3 + $0x20] sm:$0xff]  }
 0x7b9   :  { %2882 = vmatprep.subr.bf16.mxu1 %v4016_v60 }
 0x7bc   :  { %2883 = vmatpush3.bf16.msra.mxu1 %v3228_v41 }
 0x7bd   :  { %2884 = vmatprep.subr.bf16.mxu1 %v4016_v60 }
 0x7c0   :  { %2885 = vmatpush3.bf16.msra.mxu1 %v3229_v42 }
 0x7c1   :  { %2886 = vmatprep.subr.bf16.mxu1 %v4016_v60 }
 0x7c4   :  { %2887 = vmatpush3.bf16.msra.mxu1 %v3230_v43 }
 0x7c5   :  { %2912 = vmatprep.subr.bf16.mxu1 %v4016_v60 }
 0x867   :  { %v1214_v53 = vpop.f32.mrf.mxu1 }
 0x868   :  { %3195 = vtanh.f32 %v1214_v53  ;;  %v3236_v53 = vld [vmem:[%s4375_s2 + $0x18] sm:$0xff]  }
 0x869   :  { %v2858_v54 = vpop.f32.mrf.mxu1  ;;  %3197 = vtanh.f32 %v1118_v38 }
 0x86a   :  { %v3237_v54 = vld [vmem:[%s4375_s2 + $0x10] sm:$0xff]  }
 0x86b   :  { %v1217_v55 = vpop.f32.mrf.mxu1 }
 0x86c   :  { %3199 = vtanh.f32 %v1217_v55  ;;  %v3238_v55 = vld [vmem:[%s4375_s2 + $0x8] sm:$0xff]  }
 0x86d   :  { %v2859_v56 = vpop.f32.mrf.mxu1 }
 0x86e   :  { %v3239_v56 = vld [vmem:[%s4375_s2] sm:$0xff]  }
 0x875   :  { %v3196_v58 = vpop.eup %3195 }
 0x876   :  { %v1223_v61 = vmul.f32 %v3196_v58, %v2838_v39  ;;  %v3198_v62 = vpop.eup %3197 }
 0x877   :  { %v1125_v35 = vmul.f32 %v3198_v62, %v4031_v5 }
 0x878   :  { %v1225_v63 = vadd.f32 %v1223_v61, %v1124_v59 }
 0x879   :  { %v3200_v17 = vpop.eup %3199 }
 0x87a   :  { %v1271_v32 = vadd.f32 %v1270_v44, %v1225_v63  ;;  %v1224_v36 = vmul.f32 %v3200_v17, %v2839_v40  ;;  %v3151_v44 = vld [vmem:[%s4389_s16] sm:$0xff]  }
 0x87c   :  { %v1277_v0 = vmax.f32 %v1271_v32, 0.0  ;;  %v1226_v37 = vadd.f32 %v1224_v36, %v1125_v35 }
 0x87e   :  { %v1274_v14 = vadd.f32 %v1273_v46, %v1226_v37  ;;  %1279 = vadd.xlane.f32.xlu0 %v1277_v0  ;;  %v3153_v46 = vld [vmem:[%s4389_s16 + $0x10] sm:$0xff]  }
 0x880   :  { %v1278_v1 = vmax.f32 %v1274_v14, 0.0 }
 0x882   :  { %1281 = vadd.xlane.f32.xlu1 %v1278_v1 }
 0x907   :  { %v1280_v31 = vpop.xlane.xlu0 %1279 }
 0x908   :  { %v1283_v3 = vmul.f32 0.0078125, %v1280_v31 }
 0x90a   :  { %v1285_v30 = vsub.f32 %v1277_v0, %v1283_v3 }
 0x90b   :  { %v1282_v33 = vpop.xlane.xlu1 %1281 }
 0x90c   :  { %v1284_v4 = vmul.f32 0.0078125, %v1282_v33  ;;  %v1287_v2 = vmul.f32 %v1285_v30, %v1285_v30 }
 0x90e   :  { %v1286_v34 = vsub.f32 %v1278_v1, %v1284_v4  ;;  %1289 = vadd.xlane.f32.xlu0 %v1287_v2 }
 0x910   :  { %v1288_v10 = vmul.f32 %v1286_v34, %v1286_v34 }
 0x912   :  { %1291 = vadd.xlane.f32.xlu1 %v1288_v10 }
 0x997   :  { %v1290_v38 = vpop.xlane.xlu0 %1289 }
 0x998   :  { %v1293_v9 = vmul.f32 0.0078125, %v1290_v38 }
 0x99a   :  { %v1295_v5 = vadd.f32 1e-05, %v1293_v9 }
 0x99b   :  { %v1292_v39 = vpop.xlane.xlu1 %1291 }
 0x99c   :  { %v1294_v12 = vmul.f32 0.0078125, %v1292_v39  ;;  %3201 = vrsqrt.f32 %v1295_v5 }
 0x99e   :  { %v1296_v40 = vadd.f32 1e-05, %v1294_v12 }
 0x9a0   :  { %3203 = vrsqrt.f32 %v1296_v40  ;;  %v3155_v40 = vld [vmem:[%s4378_s5 + $0x38] sm:$0xff]  }
 0x9a9   :  { %v3202_v11 = vpop.eup %3201 }
 0x9aa   :  { %v1299_v13 = vmul.f32 %v3202_v11, %v1285_v30 }
 0x9ad   :  { %v3204_v15 = vpop.eup %3203 }
 0x9ae   :  { %v1300_v16 = vmul.f32 %v3204_v15, %v1286_v34  ;;  %v3157_v15 = vld [vmem:[%s4378_s5 + $0x30] sm:$0xff]  }
 0x9b0   :  { %v4134_v18 = vpack.c.bf16 %v1300_v16, %v1299_v13  ;;  %v3159_v13 = vld [vmem:[%s4378_s5 + $0x28] sm:$0xff]  }
 0x9b1   :  { %v3160_v16 = vld [vmem:[#allocation2 + $0x28] sm:$0xff]  }
 0x9b2   :  { %2889 = vmatmul.mubr.bf16.vlgmr.msra.gmra.mxu1 %v4134_v18  ;;  %2909 = vmatmul.mubr.bf16.vlgmr.msra.gmra.mxu0 %v4134_v18 }
 0x9b3   :  { %2913 = vmatpush3.bf16.msra.mxu1 %v3231_v20  ;;  %2928 = vmatprep.mubr.msk.bf16.mxu1 %vm3421_vm0, %v4016_v60  ;;  %v3162_v20 = vld [vmem:[#allocation2 + $0x20] sm:$0xff]  }
 0x9b4   :  { %2914 = vmatprep.subr.bf16.mxu1 %v4016_v60  ;;  %2934 = vmatprep.mubr.msk.bf16.mxu0 %vm3421_vm0, %v4016_v60 }
 0x9b7   :  { %2915 = vmatpush3.bf16.msra.mxu1 %v3232_v19  ;;  %v3163_v19 = vld [vmem:[%s4378_s5 + $0x18] sm:$0xff]  }
 0x9b8   :  { %2916 = vmatprep.subr.bf16.mxu1 %v4016_v60 }
 0x9bb   :  { %2917 = vmatpush3.bf16.msra.mxu1 %v3233_v21  ;;  %v3164_v21 = vld [vmem:[#allocation2 + $0x18] sm:$0xff]  }
 0x9bc   :  { %2918 = vmatprep.subr.bf16.mxu1 %v4016_v60 }
 0x9bf   :  { %2919 = vmatpush3.bf16.msra.mxu1 %v3234_v22  ;;  %v3165_v22 = vld [vmem:[%s4378_s5 + $0x10] sm:$0xff]  }
 0x9c0   :  { %2920 = vmatprep.subr.bf16.mxu1 %v4016_v60 }
 0x9c3   :  { %2921 = vmatpush3.bf16.msra.mxu1 %v3717_v23 }
 0x9c4   :  { %2922 = vmatprep.subr.bf16.mxu1 %v4016_v60 }
 0x9c7   :  { %2923 = vmatpush3.bf16.msra.mxu1 %v3724_v24 }
 0x9c8   :  { %2924 = vmatprep.subr.bf16.mxu1 %v4016_v60 }
 0x9cb   :  { %2925 = vmatpush3.bf16.msra.mxu1 %v3731_v25 }
 0x9cc   :  { %2926 = vmatprep.subr.bf16.mxu1 %v4016_v60 }
 0x9cf   :  { %2927 = vmatpush3.bf16.msra.mxu1 %v3739_v26 }
 0x9d0   :  { %2966 = vmatprep.subr.bf16.mxu1 %v3746_v27 }
 0x9d2   :  { %2929 = vmatmul.mubr.bf16.vlgmr.msra.gmra.mxu1 %v4134_v18 }
 0x9d3   :  { %2967 = vmatpush3.bf16.msra.mxu1 %v3746_v27 }
 0x9d4   :  { %2968 = vmatprep.subr.bf16.mxu1 %v3751_v28 }
 0x9d7   :  { %2969 = vmatpush3.bf16.msra.mxu1 %v3751_v28 }
 0x9d8   :  { %2970 = vmatprep.subr.bf16.mxu1 %v3759_v29 }
 0x9db   :  { %2971 = vmatpush3.bf16.msra.mxu1 %v3759_v29 }
 0x9dc   :  { %2972 = vmatprep.subr.bf16.mxu1 %v3813_v48 }
 0x9df   :  { %2973 = vmatpush3.bf16.msra.mxu1 %v3813_v48 }
 0x9e0   :  { %2974 = vmatprep.subr.bf16.mxu1 %v3820_v49 }
 0x9e3   :  { %2975 = vmatpush3.bf16.msra.mxu1 %v3820_v49 }
 0x9e4   :  { %2976 = vmatprep.subr.bf16.mxu1 %v3827_v50 }
 0x9e7   :  { %2977 = vmatpush3.bf16.msra.mxu1 %v3827_v50 }
 0x9e8   :  { %2978 = vmatprep.subr.bf16.mxu1 %v3834_v51 }
 0x9eb   :  { %2979 = vmatpush3.bf16.msra.mxu1 %v3834_v51 }
 0x9ec   :  { %2980 = vmatprep.subr.bf16.mxu1 %v3841_v52 }
 0x9ef   :  { %2981 = vmatpush3.bf16.msra.mxu1 %v3841_v52 }
 0x9f0   :  { %3006 = vmatprep.subr.bf16.mxu1 %v4016_v60 }
 0xa72   :  { %v4183_v23 = vpop.f32.mrf.mxu1  ;;  %v4185_v24 = vpop.f32.mrf.mxu0 }
 0xa74   :  { %v2890_v25 = vpop.f32.mrf.mxu1  ;;  %v2910_v26 = vpop.f32.mrf.mxu0 }
 0xa76   :  { %v4187_v27 = vpop.f32.mrf.mxu1  ;;  %v4189_v28 = vpop.f32.mrf.mxu0 }
 0xa77   :  { %v1427_v29 = vpack.c.bf16 %v4187_v27, %v4183_v23  ;;  %v1428_v48 = vpack.c.bf16 %v4189_v28, %v4185_v24  ;;  %v3166_v23 = vld [vmem:[#allocation2 + $0x10] sm:$0xff]   ;;  %v3167_v24 = vld [vmem:[%s4378_s5 + $0x8] sm:$0xff]  }
 0xa78   :  { %v2891_v49 = vpop.f32.mrf.mxu1  ;;  %v2911_v50 = vpop.f32.mrf.mxu0  ;;  %v3168_v27 = vld [vmem:[#allocation2 + $0x8] sm:$0xff]  }
 0xa79   :  { %v3170_v49 = vld [vmem:[#allocation2] sm:$0xff]  }
 0xa92   :  { %v1418_v51 = vpop.f32.mrf.mxu1 }
 0xa94   :  { %v2930_v52 = vpop.f32.mrf.mxu1 }
 0xa96   :  { %v1421_v41 = vpop.f32.mrf.mxu1 }
 0xa97   :  { %v1429_v42 = vpack.c.bf16 %v1421_v41, %v1418_v51 }
 0xa98   :  { %v2931_v43 = vpop.f32.mrf.mxu1 }
 0xa99   :  { %2933 = vmatpush3.bf16.msra.mxu0 %v1429_v42 }
 0xa9a   :  { %2946 = vmatprep.subr.bf16.mxu0 %v4016_v60 }
 0xa9c   :  { %2935 = vmatmul.mubr.msk.bf16.vlgmr.msra.gmra.mxu0 %vm1011_vm4, %v3151_v44 }
 0xa9d   :  { %2938 = vmatprep.mubr.msk.bf16.mxu0 %vm3421_vm0, %v4016_v60  ;;  %2947 = vmatpush3.bf16.msra.mxu0 %v4066_v6 }
 0xa9e   :  { %2948 = vmatprep.subr.bf16.mxu0 %v4016_v60 }
 0xaa1   :  { %2949 = vmatpush3.bf16.msra.mxu0 %v4075_v8 }
 0xaa2   :  { %2950 = vmatprep.subr.bf16.mxu0 %v4016_v60 }
 0xaa4   :  { %2939 = vmatmul.mubr.msk.bf16.gmra.mxu0 %vm1011_vm4, %v3152_v45 }
 0xaa5   :  { %2942 = vmatprep.mubr.msk.bf16.mxu0 %vm3421_vm0, %v4016_v60  ;;  %2951 = vmatpush3.bf16.msra.mxu0 %v4082_v7 }
 0xaa6   :  { %2952 = vmatprep.subr.bf16.mxu0 %v4016_v60 }
 0xaa9   :  { %2953 = vmatpush3.bf16.msra.mxu0 %v3235_v47 }
 0xaaa   :  { %2954 = vmatprep.subr.bf16.mxu0 %v4016_v60 }
 0xaac   :  { %2943 = vmatmul.mubr.msk.bf16.gmra.mxu0 %vm1011_vm4, %v3153_v46 }
 0xaad   :  { %2955 = vmatpush3.bf16.msra.mxu0 %v3236_v53  ;;  %2962 = vmatprep.mubr.msk.bf16.mxu0 %vm3421_vm0, %v4016_v60 }
 0xaae   :  { %2956 = vmatprep.subr.bf16.mxu0 %v4016_v60 }
 0xab1   :  { %2957 = vmatpush3.bf16.msra.mxu0 %v3237_v54 }
 0xab2   :  { %2958 = vmatprep.subr.bf16.mxu0 %v4016_v60 }
 0xab5   :  { %2959 = vmatpush3.bf16.msra.mxu0 %v3238_v55 }
 0xab6   :  { %2960 = vmatprep.subr.bf16.mxu0 %v4016_v60 }
 0xab9   :  { %2961 = vmatpush3.bf16.msra.mxu0 %v3239_v56 }
 0xaba   :  { %2986 = vmatprep.subr.bf16.mxu0 %v4016_v60 }
 0xb5c   :  { %v4240_v57 = vpop.f32.mrf.mxu0 }
 0xb5e   :  { %v2936_v58 = vpop.f32.mrf.mxu0 }
 0xb60   :  { %v1497_v59 = vpop.f32.mrf.mxu0 }
 0xb62   :  { %v2937_v61 = vpop.f32.mrf.mxu0 }
 0xb64   :  { %v1502_v62 = vpop.f32.mrf.mxu0 }
 0xb65   :  { %v1517_v32 = vmul.f32 %v1502_v62, %v4240_v57 }
 0xb66   :  { %v2940_v63 = vpop.f32.mrf.mxu0 }
 0xb67   :  { %v3172_v63 = vld [vmem:[#allocation4 + $0x30] sm:$0xff]  }
 0xb68   :  { %v1505_v17 = vpop.f32.mrf.mxu0 }
 0xb69   :  { %v1518_v35 = vmul.f32 %v1505_v17, %v1497_v59  ;;  %v1565_v36 = vpack.c.bf16 %v1505_v17, %v1502_v62 }
 0xb6a   :  { %v2941_v0 = vpop.f32.mrf.mxu0 }
 0xb6b   :  { %v1519_v37 = vpack.c.bf16 %v1518_v35, %v1517_v32  ;;  %2982 = vmatprep.mubr.bf16.mxu1 %v1565_v36  ;;  %v3173_v32 = vld [vmem:[#allocation4 + $0x28] sm:$0xff]   ;;  %v3174_v35 = vld [vmem:[#allocation4 + $0x20] sm:$0xff]   ;;  %v3175_v36 = vld [vmem:[#allocation4 + $0x18] sm:$0xff]  }
 0xb6c   :  { %v4243_v14 = vpop.f32.mrf.mxu0  ;;  %v3176_v0 = vld [vmem:[#allocation4 + $0x10] sm:$0xff]  }
 0xb6d   :  { %2963 = vmatmul.mubr.bf16.vlgmr.msra.gmra.mxu0 %v1519_v37  ;;  %v3177_v37 = vld [vmem:[#allocation4 + $0x8] sm:$0xff]  }
 0xb6e   :  { %v2944_v1 = vpop.f32.mrf.mxu0  ;;  %2987 = vmatpush3.bf16.msra.mxu0 %v4066_v6  ;;  %3002 = vmatprep.mubr.msk.bf16.mxu0 %vm3421_vm0, %v4016_v60  ;;  %v3154_v6 = vld [vmem:[#allocation13] sm:$0xff]  }
 0xb6f   :  { %2988 = vmatprep.subr.bf16.mxu0 %v4016_v60 }
 0xb70   :  { %v4249_v31 = vpop.f32.mrf.mxu0 }
 0xb71   :  { %v1566_v3 = vpack.c.bf16 %v4249_v31, %v4243_v14 }
 0xb72   :  { %v2945_v30 = vpop.f32.mrf.mxu0  ;;  %2989 = vmatpush3.bf16.msra.mxu0 %v4075_v8  ;;  %v3156_v8 = vld [vmem:[#allocation2 + $0x38] sm:$0xff]  }
 0xb73   :  { %2983 = vmatmul.mubr.bf16.vlgmr.msra.gmra.mxu1 %v1566_v3  ;;  %2990 = vmatprep.subr.bf16.mxu0 %v4016_v60 }
 0xb74   :  { %3007 = vmatpush3.bf16.msra.mxu1 %v1429_v42  ;;  %3014 = vmatprep.mubr.msk.bf16.mxu1 %vm3421_vm0, %v4016_v60 }
 0xb75   :  { %3008 = vmatprep.subr.bf16.mxu1 %v4016_v60 }
 0xb76   :  { %2991 = vmatpush3.bf16.msra.mxu0 %v4082_v7  ;;  %v3158_v7 = vld [vmem:[#allocation2 + $0x30] sm:$0xff]  }
 0xb77   :  { %2992 = vmatprep.subr.bf16.mxu0 %v4016_v60 }
 0xb78   :  { %3009 = vmatpush3.bf16.msra.mxu1 %v1428_v48 }
 0xb79   :  { %3010 = vmatprep.subr.bf16.mxu1 %v4016_v60 }
 0xb7a   :  { %2993 = vmatpush3.bf16.msra.mxu0 %v3235_v47 }
 0xb7b   :  { %2994 = vmatprep.subr.bf16.mxu0 %v4016_v60 }
 0xb7c   :  { %3011 = vmatpush3.bf16.msra.mxu1 %v1427_v29  ;;  %v3169_v29 = vld [vmem:[%s4378_s5] sm:$0xff]  }
 0xb7d   :  { %3012 = vmatprep.subr.bf16.mxu1 %v4016_v60 }
 0xb7e   :  { %2995 = vmatpush3.bf16.msra.mxu0 %v3236_v53 }
 0xb7f   :  { %2996 = vmatprep.subr.bf16.mxu0 %v4016_v60 }
 0xb80   :  { %3013 = vmatpush3.bf16.msra.mxu1 %v4134_v18  ;;  %v3161_v18 = vld [vmem:[%s4378_s5 + $0x20] sm:$0xff]  }
 0xb81   :  { %3038 = vmatprep.subr.bf16.mxu1 %v4016_v60 }
 0xb82   :  { %2997 = vmatpush3.bf16.msra.mxu0 %v3237_v54 }
 0xb83   :  { %2998 = vmatprep.subr.bf16.mxu0 %v4016_v60  ;;  %3015 = vmatmul.mubr.msk.bf16.vlgmr.msra.gmra.mxu1 %vm1232_vm5, %v3154_v6  ;;  %v2106_v6 = vld [vmem:[#allocation7] sm:$0xf] }
 0xb84   :  { %3054 = vmatprep.mubr.msk.bf16.mxu1 %vm3421_vm0, %v4016_v60  ;;  %3039 = vmatpush3.bf16.msra.mxu1 %v3156_v8 }
 0xb85   :  { %3040 = vmatprep.subr.bf16.mxu1 %v4016_v60 }
 0xb86   :  { %2999 = vmatpush3.bf16.msra.mxu0 %v3238_v55 }
 0xb87   :  { %3000 = vmatprep.subr.bf16.mxu0 %v4016_v60 }
 0xb88   :  { %3041 = vmatpush3.bf16.msra.mxu1 %v3158_v7 }
 0xb89   :  { %3042 = vmatprep.subr.bf16.mxu1 %v4016_v60 }
 0xb8a   :  { %3001 = vmatpush3.bf16.msra.mxu0 %v3239_v56 }
 0xb8b   :  { %3018 = vmatprep.subr.bf16.mxu0 %v4016_v60 }
 0xb8c   :  { %3043 = vmatpush3.bf16.msra.mxu1 %v3160_v16 }
 0xb8d   :  { %3044 = vmatprep.subr.bf16.mxu1 %v4016_v60 }
 0xb90   :  { %3045 = vmatpush3.bf16.msra.mxu1 %v3162_v20 }
 0xb91   :  { %3046 = vmatprep.subr.bf16.mxu1 %v4016_v60 }
 0xb94   :  { %3047 = vmatpush3.bf16.msra.mxu1 %v3164_v21 }
 0xb95   :  { %3048 = vmatprep.subr.bf16.mxu1 %v4016_v60 }
 0xb98   :  { %3049 = vmatpush3.bf16.msra.mxu1 %v3166_v23 }
 0xb99   :  { %3050 = vmatprep.subr.bf16.mxu1 %v4016_v60 }
 0xb9c   :  { %3051 = vmatpush3.bf16.msra.mxu1 %v3168_v27 }
 0xb9d   :  { %3052 = vmatprep.subr.bf16.mxu1 %v4016_v60 }
 0xba0   :  { %3053 = vmatpush3.bf16.msra.mxu1 %v3170_v49  ;;  %v3179_v49 = vld [vmem:[#allocation9 + $0x8] sm:$0xff]  }
 0xba1   :  { %3078 = vmatprep.subr.bf16.mxu1 %v4016_v60 }
 0xc2d   :  { %v1554_v33 = vpop.f32.mrf.mxu0 }
 0xc2e   :  { %3205 = vtanh.f32 %v1554_v33 }
 0xc2f   :  { %v2964_v4 = vpop.f32.mrf.mxu0 }
 0xc31   :  { %v1557_v2 = vpop.f32.mrf.mxu0 }
 0xc33   :  { %v2965_v34 = vpop.f32.mrf.mxu0  ;;  %v4280_v10 = vpop.f32.mrf.mxu1 }
 0xc34   :  { %v2112_v34 = vsel %vm512_vm1, %v2106_v6, 0 }
 0xc35   :  { %v1601_v38 = vpop.f32.mrf.mxu1 }
 0xc36   :  { %v1616_v39 = vmul.f32 %v1601_v38, %v4240_v57  ;;  %v3171_v57 = vld [vmem:[#allocation4 + $0x38] sm:$0xff]  }
 0xc37   :  { %v4282_v9 = vpop.f32.mrf.mxu1 }
 0xc39   :  { %v1604_v5 = vpop.f32.mrf.mxu1 }
 0xc3a   :  { %v1617_v12 = vmul.f32 %v1604_v5, %v1497_v59 }
 0xc3b   :  { %v3206_v42 = vpop.eup %3205 }
 0xc3c   :  { %v1618_v11 = vpack.c.bf16 %v1617_v12, %v1616_v39  ;;  %v1563_v44 = vmul.f32 %v3206_v42, %v4243_v14  ;;  %v3178_v14 = vld [vmem:[#allocation4] sm:$0xff]  }
 0xc3e   :  { %3003 = vmatmul.mubr.bf16.vlgmr.msra.gmra.mxu0 %v1618_v11 }
 0xc3f   :  { %3019 = vmatpush3.bf16.msra.mxu0 %v3155_v40  ;;  %3034 = vmatprep.mubr.msk.bf16.mxu0 %vm3421_vm0, %v4016_v60  ;;  %v2041_v40 = vlaneseq }
 0xc40   :  { %3020 = vmatprep.subr.bf16.mxu0 %v4016_v60 }
 0xc41   :  { %v4351_v11 = vshrl.u32 %v2041_v40, 7 }
 0xc43   :  { %3021 = vmatpush3.bf16.msra.mxu0 %v3157_v15  ;;  %v1708_v25 = vpop.f32.mrf.mxu1  ;;  %v2043_v15 = vsub.s32 0, %v4351_v11 }
 0xc44   :  { %3022 = vmatprep.subr.bf16.mxu0 %v4016_v60 }
 0xc45   :  { %v3016_v26 = vpop.f32.mrf.mxu1 }
 0xc47   :  { %3023 = vmatpush3.bf16.msra.mxu0 %v3159_v13  ;;  %v1711_v28 = vpop.f32.mrf.mxu1 }
 0xc48   :  { %3024 = vmatprep.subr.bf16.mxu0 %v4016_v60 }
 0xc49   :  { %v3017_v48 = vpop.f32.mrf.mxu1 }
 0xc4b   :  { %3025 = vmatpush3.bf16.msra.mxu0 %v3161_v18 }
 0xc4c   :  { %3026 = vmatprep.subr.bf16.mxu0 %v4016_v60 }
 0xc4f   :  { %3027 = vmatpush3.bf16.msra.mxu0 %v3163_v19 }
 0xc50   :  { %3028 = vmatprep.subr.bf16.mxu0 %v4016_v60 }
 0xc53   :  { %3029 = vmatpush3.bf16.msra.mxu0 %v3165_v22 }
 0xc54   :  { %3030 = vmatprep.subr.bf16.mxu0 %v4016_v60 }
 0xc57   :  { %3031 = vmatpush3.bf16.msra.mxu0 %v3167_v24 }
 0xc58   :  { %3032 = vmatprep.subr.bf16.mxu0 %v4016_v60 }
 0xc5b   :  { %3033 = vmatpush3.bf16.msra.mxu0 %v3169_v29 }
 0xc5c   :  { %3058 = vmatprep.subr.bf16.mxu0 %v4016_v60 }
 0xcfe   :  { %v1653_v50 = vpop.f32.mrf.mxu0 }
 0xcff   :  { %3207 = vtanh.f32 %v1653_v50  ;;  %v3180_v50 = vld [vmem:[#allocation9] sm:$0xff]  }
 0xd00   :  { %v3004_v51 = vpop.f32.mrf.mxu0  ;;  %3209 = vtanh.f32 %v1557_v2 }
 0xd02   :  { %v1656_v52 = vpop.f32.mrf.mxu0 }
 0xd03   :  { %3211 = vtanh.f32 %v1656_v52 }
 0xd04   :  { %v3005_v41 = vpop.f32.mrf.mxu0 }
 0xd0c   :  { %v3208_v43 = vpop.eup %3207 }
 0xd0d   :  { %v1662_v45 = vmul.f32 %v3208_v43, %v4280_v10  ;;  %v3210_v46 = vpop.eup %3209 }
 0xd0e   :  { %v1564_v55 = vmul.f32 %v3210_v46, %v4249_v31  ;;  %v2058_v31 = vld [vmem:[#allocation6] sm:$0xf] }
 0xd0f   :  { %v1664_v47 = vadd.f32 %v1662_v45, %v1563_v44  ;;  %v2064_v3 = vsel %vm512_vm1, %v2058_v31, 0 }
 0xd10   :  { %v3212_v53 = vpop.eup %3211 }
 0xd11   :  { %v1709_v54 = vadd.f32 %v1708_v25, %v1664_v47  ;;  %v1663_v56 = vmul.f32 %v3212_v53, %v4282_v9 }
 0xd13   :  { %v1731_v58 = vpack.c.bf16 %v1709_v54, %v1709_v54  ;;  %v1665_v59 = vadd.f32 %v1663_v56, %v1564_v55 }
 0xd15   :  { %v1837_v61 = vrot.slane %v1731_v58, 1  ;;  %v1712_v62 = vadd.f32 %v1711_v28, %v1665_v59  ;;  %3035 = vmatmul.mubr.bf16.vlgmr.msra.gmra.mxu0 %v1731_v58 }
 0xd16   :  { %3059 = vmatpush3.bf16.msra.mxu0 %v3171_v57  ;;  %3074 = vmatprep.mubr.msk.bf16.mxu0 %vm3421_vm0, %v4016_v60 }
 0xd17   :  { %v1943_v17 = vpack.c.bf16 %v1712_v62, %v1709_v54  ;;  %3055 = vmatmul.mubr.bf16.vlgmr.msra.gmra.mxu1 %v1837_v61  ;;  %3060 = vmatprep.subr.bf16.mxu0 %v4016_v60 }
 0xd18   :  { %3080 = vmatprep.mubr.msk.bf16.mxu1 %vm3421_vm0, %v4016_v60  ;;  %3079 = vmatpush3.bf16.msra.mxu1 %v2064_v3 }
 0xd19   :  { %v1945_v1 = vrot.slane %v1943_v17, 3  ;;  %3084 = vmatprep.subr.bf16.mxu1 %v4016_v60 }
 0xd1a   :  { %3061 = vmatpush3.bf16.msra.mxu0 %v3172_v63 }
 0xd1b   :  { %3062 = vmatprep.subr.bf16.mxu0 %v4016_v60 }
 0xd1e   :  { %3063 = vmatpush3.bf16.msra.mxu0 %v3173_v32 }
 0xd1f   :  { %3064 = vmatprep.subr.bf16.mxu0 %v4016_v60 }
 0xd22   :  { %3065 = vmatpush3.bf16.msra.mxu0 %v3174_v35 }
 0xd23   :  { %3066 = vmatprep.subr.bf16.mxu0 %v4016_v60 }
 0xd26   :  { %3067 = vmatpush3.bf16.msra.mxu0 %v3175_v36 }
 0xd27   :  { %3068 = vmatprep.subr.bf16.mxu0 %v4016_v60 }
 0xd2a   :  { %3069 = vmatpush3.bf16.msra.mxu0 %v3176_v0 }
 0xd2b   :  { %3070 = vmatprep.subr.bf16.mxu0 %v4016_v60 }
 0xd2e   :  { %3071 = vmatpush3.bf16.msra.mxu0 %v3177_v37 }
 0xd2f   :  { %3072 = vmatprep.subr.bf16.mxu0 %v4016_v60 }
 0xd32   :  { %3073 = vmatpush3.bf16.msra.mxu0 %v3178_v14 }
 0xd35   :  { %3075 = vmatmul.mubr.bf16.vlgmr.msra.gmra.mxu0 %v1945_v1 }
 0xdd5   :  { %v1814_v30 = vpop.f32.mrf.mxu0 }
 0xdd6   :  { %v2035_v8 = vmul.f32 %v1814_v30, %v1814_v30 }
 0xdd7   :  { %v3036_v7 = vpop.f32.mrf.mxu0  ;;  %v4342_v33 = vpop.f32.mrf.mxu1 }
 0xdd8   :  { %v2037_v4 = vrot.slane %v2035_v8, 1  ;;  %v2059_v2 = vpack.c.bf16 %v4342_v33, %v4342_v33 }
 0xdd9   :  { %v1817_v10 = vpop.f32.mrf.mxu0  ;;  %v3056_v38 = vpop.f32.mrf.mxu1 }
 0xdda   :  { %v2039_v9 = vadd.f32 %v2037_v4, %v2035_v8  ;;  %3081 = vmatmul.mubr.msk.bf16.vlgmr.msra.gmra.mxu1 %vm502_vm2, %v2059_v2 }
 0xddb   :  { %v3037_v5 = vpop.f32.mrf.mxu0  ;;  %v1924_v39 = vpop.f32.mrf.mxu1  ;;  %3085 = vmatpush3.bf16.msra.mxu1 %v2112_v34  ;;  %3086 = vmatprep.mubr.msk.bf16.mxu1 %vm3421_vm0, %v4016_v60 }
 0xddc   :  { %3213 = vrsqrt.f32 %v2039_v9  ;;  %3090 = vmatprep.subr.bf16.mxu1 %v4016_v60 }
 0xddd   :  { %v3057_v12 = vpop.f32.mrf.mxu1 }
 0xde9   :  { %v3214_v13 = vpop.eup %3213 }
 0xdea   :  { %v2044_v16 = vrot.slane %v3214_v13, %v2043_v15 }
 0xdec   :  { %v2045_v18 = vmul.f32 %v2044_v16, %v1814_v30 }
 0xdee   :  { %2257 = vst.msk [vmem:[%s4390_s17] sm:$0x3] %vm2256_vm6, %v2045_v18 }
 0xdf5   :  { %v2029_v20 = vpop.f32.mrf.mxu0 }
 0xdf6   :  { %v2046_v19 = vmul.f32 %v2029_v20, %v2029_v20 }
 0xdf7   :  { %v3076_v21 = vpop.f32.mrf.mxu0 }
 0xdf8   :  { %v2048_v22 = vrot.slane %v2046_v19, 2 }
 0xdf9   :  { %v2032_v23 = vpop.f32.mrf.mxu0 }
 0xdfa   :  { %v2050_v24 = vadd.f32 %v2048_v22, %v2046_v19 }
 0xdfb   :  { %v3077_v25 = vpop.f32.mrf.mxu0 }
 0xdfc   :  { %3215 = vrsqrt.f32 %v2050_v24 }
 0xe09   :  { %v3216_v26 = vpop.eup %3215 }
 0xe0a   :  { %v2053_v27 = vrot.slane %v3216_v26, 6 }
 0xe0c   :  { %v2056_v28 = vsel %vm2055_vm7, %v3216_v26, %v2053_v27 }
 0xe0d   :  { %v2057_v29 = vmul.f32 %v2056_v28, %v2029_v20 }
 0xe0f   :  { %v2107_v48 = vpack.c.bf16 %v2057_v29, %v2057_v29  ;;  %2261 = vrot.lane.b32.xlu0 %v2057_v29, %s3422_s12 }
 0xe11   :  { %3087 = vmatmul.mubr.msk.bf16.vlgmr.msra.gmra.mxu1 %vm502_vm2, %v2107_v48 }
 0xe12   :  { %3094 = vmatprep.mubr.msk.bf16.mxu1 %vm3421_vm0, %v4016_v60  ;;  %3091 = vmatpush3.bf16.msra.mxu1 %v3179_v49 }
 0xe13   :  { %3092 = vmatprep.subr.bf16.mxu1 %v4016_v60 }
 0xe16   :  { %3093 = vmatpush3.bf16.msra.mxu1 %v3180_v50 }
 0xe81   :  { %v2262_v40 = vpop.permute.xlu0 %2261 }
 0xe9a   :  { %v2100_v51 = vpop.f32.mrf.mxu1 }
 0xe9b   :  { %v2171_v43 = vrot.slane %v2100_v51, 6  ;;  %v2168_v45 = vrot.slane %v2100_v51, 2 }
 0xe9c   :  { %v3082_v52 = vpop.f32.mrf.mxu1 }
 0xe9e   :  { %v2103_v41 = vpop.f32.mrf.mxu1 }
 0xea0   :  { %v3083_v42 = vpop.f32.mrf.mxu1 }
 0xed1   :  { %v2148_v44 = vpop.f32.mrf.mxu1 }
 0xed2   :  { %v2154_v46 = vmul.f32 %v2148_v44, %v2100_v51  ;;  %v2173_v47 = vmul.f32 %v2171_v43, %v2148_v44  ;;  %v2170_v55 = vmul.f32 %v2168_v45, %v2148_v44 }
 0xed3   :  { %v3088_v53 = vpop.f32.mrf.mxu1 }
 0xed4   :  { %v2156_v54 = vrot.slane %v2154_v46, 2  ;;  %v2175_v56 = vrot.slane %v2173_v47, 2 }
 0xed5   :  { %v2151_v57 = vpop.f32.mrf.mxu1 }
 0xed6   :  { %v2158_v58 = vsub.f32 %v2154_v46, %v2156_v54  ;;  %v2177_v59 = vadd.f32 %v2175_v56, %v2170_v55 }
 0xed7   :  { %v3089_v60 = vpop.f32.mrf.mxu1 }
 0xed8   :  { %v2160_v61 = vsel %vm2159_vm8, %v2158_v58, 0.0  ;;  %v2178_v62 = vsel %vm2159_vm8, %v2177_v59, 0.0 }
 0xed9   :  { %v2161_v63 = vrot.slane %v2160_v61, 4  ;;  %v2179_v17 = vrot.slane %v2178_v62, 4 }
 0xedb   :  { %v2162_v32 = vadd.f32 %v2161_v63, %v2160_v61  ;;  %v2180_v35 = vadd.f32 %v2179_v17, %v2178_v62 }
 0xedd   :  { %v2163_v36 = vrot.slane %v2162_v32, 2  ;;  %v2181_v0 = vrot.slane %v2180_v35, 2 }
 0xedf   :  { %v2164_v37 = vadd.f32 %v2163_v36, %v2162_v32  ;;  %v2182_v14 = vadd.f32 %v2181_v0, %v2180_v35 }
 0xee1   :  { %v2165_v1 = vrot.slane %v2164_v37, 1  ;;  %v2183_v31 = vrot.slane %v2182_v14, 1 }
 0xee3   :  { %v2166_v3 = vadd.f32 %v2165_v1, %v2164_v37  ;;  %v2184_v30 = vadd.f32 %v2183_v31, %v2182_v14 }
 0xee5   :  { %v2185_v6 = vmul.f32 %v2166_v3, %v2166_v3  ;;  %v2186_v8 = vmul.f32 %v2184_v30, %v2184_v30 }
 0xee7   :  { %v2187_v7 = vadd.f32 %v2186_v8, %v2185_v6 }
 0xee9   :  { %v2192_v4 = vpack.c.bf16 %v2187_v7, %v2187_v7 }
 0xeeb   :  { %3095 = vmatmul.mubr.msk.bf16.vlgmr.msra.gmra.mxu1 %vm791_vm3, %v2192_v4 }
 0xfab   :  { %v2242_v2 = vpop.f32.mrf.mxu1 }
 0xfac   :  { %3217 = vrsqrt.f32 %v2242_v2 }
 0xfad   :  { %v3096_v34 = vpop.f32.mrf.mxu1 }
 0xfaf   :  { %v2245_v10 = vpop.f32.mrf.mxu1 }
 0xfb1   :  { %v3097_v38 = vpop.f32.mrf.mxu1 }
 0xfb9   :  { %v3218_v9 = vpop.eup %3217 }
 0xfba   :  { %v2249_v5 = vmul.f32 0.5, %v3218_v9 }
 0xfbc   :  { %v2253_v39 = vrot.slane %v2249_v5, %v2043_v15 }
 0xfbe   :  { %v2254_v12 = vmul.f32 %v2253_v39, %v4342_v33 }
 0xfc0   :  { %2259 = vst.msk [vmem:[%s4390_s17 + $0x2] sm:$0xf] %vm2258_vm9, %v2254_v12 }
 0xfc1   :  { %2265 = vst.msk [vmem:[%s4390_s17 + $0x2] sm:$0xf] %vm2264_vm10, %v2262_v40 }
 0xfc2   :  { %2270 = vsyncpa [#allocation3], 1 }
 0xfc3   :  { %2271 = vsyncpa [#allocation5], 1 }
 0xfc4   :  { %2272 = vsyncpa [#allocation8], 1 }
 0xfc5   :  { %2273 = vsyncpa [#allocation11], 1 }
 0xfc6   :  { %2274 = vsyncpa [#allocation14], 1 }

</bundles_post_ra>
